<compile_context>
chip_gen: v7x
topology: tpu7x:2x2x1
jax: 0.10.0
libtpu: 0.0.40
codegen_flags: <defaults>
</compile_context>

<pallas_src>
import numpy as np
import jax
import jax.numpy as jnp
from jax.experimental import pallas as pl
from jax.experimental.pallas import tpu as pltpu


def _round_up(x, m):
    return ((x + m - 1) // m) * m


# ----------------------------- Pallas kernel ------------------------------- #

def _gcn_fused_kernel(adj_ref, x_ref, o_ref):
    # Row L2-normalize: F.normalize(x, p=2, dim=1) -> x / max(||x||_2, 1e-12).
    # x * rsqrt(max(sumsq, 1e-24)) == x / max(sqrt(sumsq), 1e-12): rsqrt runs
    # on the EUP slot, so normalization overlaps with surrounding VPU work.
    x = x_ref[...]
    ssq = jnp.sum(x * x, axis=-1, keepdims=True)
    xn = x * jax.lax.rsqrt(jnp.maximum(ssq, 1e-24))

    adj = adj_ref[...]
    # First hop: h = A_hat @ x_norm   (MXU, f32 accumulation).
    h = jnp.dot(adj, xn, preferred_element_type=jnp.float32)
    # Second hop with fused residuals: x_hat = A_hat @ h + h + x_norm.
    # (adj is loaded once and reused for both matmuls; h / xn never leave VMEM.)
    o_ref[...] = (jnp.dot(adj, h, preferred_element_type=jnp.float32)
                  + h + xn).astype(o_ref.dtype)


def gcn_fused(adj_p, x):
    """x_hat = A@A@normalize(x) + A@normalize(x) + normalize(x), one kernel.

    `adj_p` is the dense normalized adjacency already zero-padded to
    (Np, Np) with Np a multiple of 128; `x` is the unpadded (N, D) input.
    """
    N, D = x.shape
    Np = adj_p.shape[0]
    assert adj_p.shape == (Np, Np) and Np % 128 == 0 and Np >= N
    Dp = _round_up(D, 128)

    # Pad node features: lane-dense (unmasked) loads/stores, exact result.
    x_p = jnp.pad(x, ((0, Np - N), (0, Dp - D)))

    # VMEM budget guard (inputs/outputs double-buffered by the pipeline).
    vmem_bytes = 4 * 2 * (Np * Np + 2 * Np * Dp)
    assert vmem_bytes < 12 * 1024 * 1024, (
        "graph too large for the fully fused single-block kernel")
    # TODO(synk): for graphs that do not fit VMEM, fall back to a tiled
    # two-kernel pipeline with an M-parallel grid (also lets v7x's two
    # TensorCores split the rows); keep matmul inputs bf16 there for v6e/v7x.

    cost = pl.CostEstimate(
        flops=2 * 2 * Np * Np * Dp + 4 * Np * Dp,   # two dense matmuls + adds
        transcendentals=Np,                          # one rsqrt per row
        bytes_accessed=4 * (Np * Np + 2 * Np * Dp),
    )

    out_p = pl.pallas_call(
        _gcn_fused_kernel,
        out_shape=jax.ShapeDtypeStruct((Np, Dp), x.dtype),
        grid_spec=pltpu.PrefetchScalarGridSpec(
            num_scalar_prefetch=0,
            grid=(1,),
            in_specs=[
                pl.BlockSpec((Np, Np), lambda i: (0, 0)),
                pl.BlockSpec((Np, Dp), lambda i: (0, 0)),
            ],
            out_specs=pl.BlockSpec((Np, Dp), lambda i: (0, 0)),
        ),
        compiler_params=pltpu.CompilerParams(
            dimension_semantics=("arbitrary",)),
        cost_estimate=cost,
    )(adj_p, x_p)

    return out_p[:N, :D]


# --------------------------------- glue ------------------------------------ #

def build_normalized_adjacency(edge_index, num_nodes, pad_to=None):
    """Dense A_hat reproducing Base_gcn.message semantics exactly:
       remove_self_loops; deg computed from edge_index[0];
       norm = deg^-0.5[row] * deg^-0.5[col]; scatter-add into (col, row).
       Optionally zero-padded to (pad_to, pad_to) so the kernel never repads."""
    row, col = np.asarray(edge_index)
    keep = row != col                         # remove_self_loops
    row, col = row[keep], col[keep]
    deg = np.zeros(num_nodes, dtype=np.float32)
    np.add.at(deg, row, 1.0)
    with np.errstate(divide="ignore"):
        deg_inv_sqrt = deg ** -0.5            # inf for deg==0, like tensor.pow(-0.5)
    norm = (deg_inv_sqrt[row] * deg_inv_sqrt[col]).astype(np.float32)
    n = num_nodes if pad_to is None else pad_to
    assert n >= num_nodes
    adj = np.zeros((n, n), dtype=np.float32)
    np.add.at(adj, (col, row), norm)          # aggr='add' into target nodes
    return jnp.asarray(adj)


@jax.jit
def gcn_forward(preference, features, adj_p):
    # x = F.normalize(cat([preference, features], dim=0)); two hops + residuals,
    # all inside one fused Pallas kernel (concat/pad/slice glue fused under jit).
    x = jnp.concatenate([preference, features], axis=0)
    x_hat = gcn_fused(adj_p, x)
    return x_hat, preference


# --------------------------------- main ------------------------------------ #

if __name__ == "__main__":
    # Small synthetic shapes consistent with GCN.__init__ / forward.
    num_user, num_item = 32, 224
    dim_latent = 64
    D = dim_latent * 3                         # preference dim = dim_latent * 3
    N = num_user + num_item
    Np = _round_up(N, 128)

    key = jax.random.PRNGKey(0)
    k_pref, k_feat = jax.random.split(key)

    # preference: xavier_normal_(randn(num_user, 3*dim_latent), gain=1)
    xavier_std = float(np.sqrt(2.0 / (num_user + D)))
    preference = jax.random.normal(k_pref, (num_user, D), jnp.float32) * xavier_std
    # features passed to forward (must match preference width for cat along dim 0)
    features = jax.random.normal(k_feat, (num_item, D), jnp.float32)

    # Deterministic bipartite user-item edges (both directions) + a few self-loops
    rows, cols = [], []
    for u in range(num_user):
        for j in range(5):
            it = num_user + (u * 7 + j) % num_item
            rows += [u, it]
            cols += [it, u]
    for s in (0, 5, num_user + 3):             # self-loops (removed inside forward)
        rows.append(s)
        cols.append(s)
    edge_index = np.stack([np.array(rows, np.int32), np.array(cols, np.int32)])

    adj_p = build_normalized_adjacency(edge_index, N, pad_to=Np)

    x_hat, pref_out = gcn_forward(preference, features, adj_p)
    jax.block_until_ready((x_hat, pref_out))

    # pure-JAX reference for sanity
    adj = adj_p[:N, :N]
    xr = jnp.concatenate([preference, features], axis=0)
    xr = xr / jnp.maximum(jnp.linalg.norm(xr, axis=1, keepdims=True), 1e-12)
    hr = adj @ xr
    ref = hr + xr + adj @ hr
    np.testing.assert_allclose(np.asarray(x_hat), np.asarray(ref), rtol=1e-4, atol=1e-4)

    print("KERNEL_OK")
</pallas_src>

<mosaic_0001>
module attributes {stable_mosaic.version = 11 : i64} {
  func.func @_gcn_fused_kernel(%arg0: i32, %arg1: memref<256x256xf32, #tpu.memory_space<vmem>>, %arg2: memref<256x256xf32, #tpu.memory_space<vmem>>, %arg3: memref<256x256xf32, #tpu.memory_space<vmem>>) attributes {dimension_semantics = [#tpu.dimension_semantics<arbitrary>], iteration_bounds = array<i64: 1>, scalar_prefetch = 0 : i64, scratch_operands = 0 : i64, tpu.core_type = #tpu.core_type<tc>, window_params = [{pipeline_mode = #tpu.pipeline_mode<synchronous>, transform_indices = @transform_0, window_bounds = array<i64: 256, 256>}, {pipeline_mode = #tpu.pipeline_mode<synchronous>, transform_indices = @transform_1, window_bounds = array<i64: 256, 256>}, {pipeline_mode = #tpu.pipeline_mode<synchronous>, transform_indices = @transform_2, window_bounds = array<i64: 256, 256>}]} {
    %c0 = arith.constant 0 : index
    %c0_0 = arith.constant 0 : index
    %0 = vector.load %arg2[%c0, %c0_0] : memref<256x256xf32, #tpu.memory_space<vmem>>, vector<256x256xf32>
    %1 = arith.mulf %0, %0 : vector<256x256xf32>
    %cst = arith.constant dense<0.000000e+00> : vector<256xf32>
    %2 = vector.multi_reduction <add>, %1, %cst [1] : vector<256x256xf32> to vector<256xf32>
    %3 = vector.shape_cast %2 : vector<256xf32> to vector<256x1xf32>
    %cst_1 = arith.constant 1.000000e-24 : f32
    %4 = vector.broadcast %cst_1 : f32 to vector<256x1xf32>
    %5 = arith.maximumf %3, %4 : vector<256x1xf32>
    %6 = math.rsqrt %5 : vector<256x1xf32>
    %7 = vector.broadcast %6 : vector<256x1xf32> to vector<256x256xf32>
    %8 = arith.mulf %0, %7 : vector<256x256xf32>
    %c0_2 = arith.constant 0 : index
    %c0_3 = arith.constant 0 : index
    %9 = vector.load %arg1[%c0_2, %c0_3] : memref<256x256xf32, #tpu.memory_space<vmem>>, vector<256x256xf32>
    %cst_4 = arith.constant dense<0.000000e+00> : vector<256x256xf32>
    %10 = tpu.matmul %9, %8, %cst_4 {dimension_numbers = #tpu.dot_dimension_numbers<[1], [0], [0], [1], [0, 0, 1, 1], [], []>} : vector<256x256xf32>, vector<256x256xf32>, vector<256x256xf32> -> vector<256x256xf32>
    %cst_5 = arith.constant dense<0.000000e+00> : vector<256x256xf32>
    %11 = tpu.matmul %9, %10, %cst_5 {dimension_numbers = #tpu.dot_dimension_numbers<[1], [0], [0], [1], [0, 0, 1, 1], [], []>} : vector<256x256xf32>, vector<256x256xf32>, vector<256x256xf32> -> vector<256x256xf32>
    %12 = arith.addf %11, %10 : vector<256x256xf32>
    %13 = arith.addf %12, %8 : vector<256x256xf32>
    %c0_6 = arith.constant 0 : index
    %c0_7 = arith.constant 0 : index
    %14 = vector.load %arg3[%c0_6, %c0_7] : memref<256x256xf32, #tpu.memory_space<vmem>>, vector<256x256xf32>
    tpu.vector_store %arg3[%c0_6, %c0_7], %13 {strides = array<i32>} : memref<256x256xf32, #tpu.memory_space<vmem>>, vector<256x256xf32>,
    return
  }
  func.func @transform_0(%arg0: i32) -> (i32, i32) {
    %c0_i32 = arith.constant 0 : i32
    %c0_i32_0 = arith.constant 0 : i32
    %c0_i32_1 = arith.constant 0 : i32
    return %c0_i32, %c0_i32_0 : i32, i32
  }
  func.func @transform_1(%arg0: i32) -> (i32, i32) {
    %c0_i32 = arith.constant 0 : i32
    %c0_i32_0 = arith.constant 0 : i32
    %c0_i32_1 = arith.constant 0 : i32
    return %c0_i32, %c0_i32_0 : i32, i32
  }
  func.func @transform_2(%arg0: i32) -> (i32, i32) {
    %c0_i32 = arith.constant 0 : i32
    %c0_i32_0 = arith.constant 0 : i32
    %c0_i32_1 = arith.constant 0 : i32
    return %c0_i32, %c0_i32_0 : i32, i32
  }
}

</mosaic_0001>

<bundles_post_ra>
// kernel: gcn_forward.1
= control target key start
LH: loop header
LB: loop body
LE: loop exit
PB: predicated region body
PF: predicated region fallthrough
CT: control target
= control target key end

     0   :  { %s2940_s1 = inlined_call_operand.vmem [shape: f32[256,256], index: 1, kind: input, shape index: {}]   ;;  %s2941_s0 = inlined_call_operand.vmem [shape: f32[256,256], index: 0, kind: input, shape index: {}]   ;;  %s2942_s2 = inlined_call_operand.vmem [shape: f32[256,256], index: 2, kind: output, shape index: {}]  }
   0x1   :  { %v1283_v0 = vld [vmem:[%s2940_s1 + $0x20] sm:$0xff]  ;;  %v1288_v1 = vld [vmem:[%s2940_s1 + $0x28] sm:$0xff]  ;;  %v1309_v7 = vld [vmem:[%s2940_s1 + $0x30] sm:$0xff] }
   0x2   :  { %v1293_v2 = vld [vmem:[%s2940_s1] sm:$0xff]  ;;  %v79_v3 = vmul.f32 %v1283_v0, %v1283_v0  ;;  %v80_v4 = vmul.f32 %v1288_v1, %v1288_v1  ;;  %v1302_v5 = vld [vmem:[%s2940_s1 + $0x8] sm:$0xff]  ;;  %v1314_v8 = vld [vmem:[%s2940_s1 + $0x38] sm:$0xff]  ;;  %v81_v10 = vmul.f32 %v1309_v7, %v1309_v7 }
   0x3   :  { %v75_v6 = vmul.f32 %v1293_v2, %v1293_v2  ;;  %v76_v9 = vmul.f32 %v1302_v5, %v1302_v5  ;;  %v82_v11 = vmul.f32 %v1314_v8, %v1314_v8  ;;  %v1325_v12 = vld [vmem:[%s2940_s1 + $0x10] sm:$0xff]  ;;  %v1330_v13 = vld [vmem:[%s2940_s1 + $0x18] sm:$0xff]  ;;  %v1349_v19 = vld [vmem:[%s2940_s1 + $0x40] sm:$0xff] }
   0x4   :  { %v1335_v14 = vld [vmem:[%s2940_s1 + $0x50] sm:$0xff]  ;;  %v145_v15 = vadd.f32 %v80_v4, %v79_v3  ;;  %v77_v16 = vmul.f32 %v1325_v12, %v1325_v12  ;;  %v78_v17 = vmul.f32 %v1330_v13, %v1330_v13  ;;  %v1344_v18 = vld [vmem:[%s2940_s1 + $0x58] sm:$0xff]  ;;  %v1354_v20 = vld [vmem:[%s2940_s1 + $0x48] sm:$0xff]  ;;  %v83_v26 = vmul.f32 %v1349_v19, %v1349_v19 }
   0x5   :  { %v139_v21 = vadd.f32 %v76_v9, %v75_v6  ;;  %v148_v22 = vadd.f32 %v82_v11, %v81_v10  ;;  %v85_v23 = vmul.f32 %v1335_v14, %v1335_v14  ;;  %v86_v24 = vmul.f32 %v1344_v18, %v1344_v18  ;;  %v1367_v28 = vld [vmem:[%s2940_s1 + $0x70] sm:$0xff]  ;;  %v1372_v29 = vld [vmem:[%s2940_s1 + $0x78] sm:$0xff]  ;;  %v1377_v30 = vld [vmem:[%s2940_s1 + $0x60] sm:$0xff] }
   0x6   :  { %146 = vadd.xlane.f32.xlu1 %v145_v15  ;;  %v142_v25 = vadd.f32 %v78_v17, %v77_v16  ;;  %v84_v27 = vmul.f32 %v1354_v20, %v1354_v20  ;;  %v1382_v31 = vld [vmem:[%s2940_s1 + $0x68] sm:$0xff]  ;;  %v89_v33 = vmul.f32 %v1367_v28, %v1367_v28  ;;  %v90_v34 = vmul.f32 %v1372_v29, %v1372_v29  ;;  %v1395_v38 = vld [vmem:[%s2940_s1 + $0x90] sm:$0xff]  ;;  %v1400_v39 = vld [vmem:[%s2940_s1 + $0x98] sm:$0xff] }
   0x7   :  { %140 = vadd.xlane.f32.xlu0 %v139_v21  ;;  %v154_v32 = vadd.f32 %v86_v24, %v85_v23  ;;  %v87_v36 = vmul.f32 %v1377_v30, %v1377_v30  ;;  %v88_v37 = vmul.f32 %v1382_v31, %v1382_v31  ;;  %v1405_v40 = vld [vmem:[%s2940_s1 + $0x80] sm:$0xff]  ;;  %v1410_v41 = vld [vmem:[%s2940_s1 + $0x88] sm:$0xff]  ;;  %v93_v43 = vmul.f32 %v1395_v38, %v1395_v38  ;;  %v1423_v48 = vld [vmem:[%s2940_s1 + $0xb0] sm:$0xff] }
   0x8   :  { %v151_v35 = vadd.f32 %v84_v27, %v83_v26  ;;  %v160_v42 = vadd.f32 %v90_v34, %v89_v33  ;;  %v94_v44 = vmul.f32 %v1400_v39, %v1400_v39  ;;  %v91_v46 = vmul.f32 %v1405_v40, %v1405_v40  ;;  %v1428_v49 = vld [vmem:[%s2940_s1 + $0xb8] sm:$0xff]  ;;  %v1433_v50 = vld [vmem:[%s2940_s1 + $0xa0] sm:$0xff]  ;;  %v1438_v51 = vld [vmem:[%s2940_s1 + $0xa8] sm:$0xff] }
   0x9   :  { %v157_v45 = vadd.f32 %v88_v37, %v87_v36  ;;  %v92_v47 = vmul.f32 %v1410_v41, %v1410_v41  ;;  %v97_v53 = vmul.f32 %v1423_v48, %v1423_v48  ;;  %v98_v54 = vmul.f32 %v1428_v49, %v1428_v49  ;;  %v1451_v58 = vld [vmem:[%s2940_s1 + $0xd0] sm:$0xff]  ;;  %v1456_v59 = vld [vmem:[%s2940_s1 + $0xd8] sm:$0xff]  ;;  %v1461_v60 = vld [vmem:[%s2940_s1 + $0xc0] sm:$0xff] }
   0xa   :  { %149 = vadd.xlane.f32.xlu1 %v148_v22  ;;  %v166_v52 = vadd.f32 %v94_v44, %v93_v43  ;;  %v95_v56 = vmul.f32 %v1433_v50, %v1433_v50  ;;  %v96_v57 = vmul.f32 %v1438_v51, %v1438_v51  ;;  %v1466_v61 = vld [vmem:[%s2940_s1 + $0xc8] sm:$0xff]  ;;  %v101_v63 = vmul.f32 %v1451_v58, %v1451_v58  ;;  %v1479_v10 = vld [vmem:[%s2940_s1 + $0xf0] sm:$0xff]  ;;  %v1484_v11 = vld [vmem:[%s2940_s1 + $0xf8] sm:$0xff] }
   0xb   :  { %143 = vadd.xlane.f32.xlu0 %v142_v25  ;;  %v163_v55 = vadd.f32 %v92_v47, %v91_v46  ;;  %v172_v62 = vadd.f32 %v98_v54, %v97_v53  ;;  %v102_v3 = vmul.f32 %v1456_v59, %v1456_v59  ;;  %v99_v6 = vmul.f32 %v1461_v60, %v1461_v60  ;;  %v1489_v15 = vld [vmem:[%s2940_s1 + $0xe0] sm:$0xff]  ;;  %v1494_v16 = vld [vmem:[%s2940_s1 + $0xe8] sm:$0xff]  ;;  %v1507_v26 = vld [vmem:[%s2940_s1 + $0x110] sm:$0xff] }
   0xc   :  { %v169_v4 = vadd.f32 %v96_v57, %v95_v56  ;;  %v100_v9 = vmul.f32 %v1466_v61, %v1466_v61  ;;  %v105_v21 = vmul.f32 %v1479_v10, %v1479_v10  ;;  %v106_v22 = vmul.f32 %v1484_v11, %v1484_v11  ;;  %v1512_v27 = vld [vmem:[%s2940_s1 + $0x118] sm:$0xff]  ;;  %v1522_v33 = vld [vmem:[%s2940_s1 + $0x108] sm:$0xff]  ;;  %v1535_v44 = vld [vmem:[%s2940_s1 + $0x130] sm:$0xff] }
   0xd   :  { %v178_v17 = vadd.f32 %v102_v3, %v101_v63  ;;  %v103_v24 = vmul.f32 %v1489_v15, %v1489_v15  ;;  %v104_v25 = vmul.f32 %v1494_v16, %v1494_v16  ;;  %v110_v36 = vmul.f32 %v1512_v27, %v1512_v27  ;;  %v1545_v46 = vld [vmem:[%s2940_s1 + $0x120] sm:$0xff]  ;;  %v1550_v47 = vld [vmem:[%s2940_s1 + $0x128] sm:$0xff]  ;;  %v1568_v63 = vld [vmem:[%s2940_s1 + $0x158] sm:$0xff] }
   0xe   :  { %155 = vadd.xlane.f32.xlu1 %v154_v32  ;;  %v175_v23 = vadd.f32 %v100_v9, %v99_v6  ;;  %v1517_v32 = vld [vmem:[%s2940_s1 + $0x100] sm:$0xff]  ;;  %v184_v34 = vadd.f32 %v106_v22, %v105_v21  ;;  %v108_v43 = vmul.f32 %v1522_v33, %v1522_v33  ;;  %v113_v53 = vmul.f32 %v1535_v44, %v1535_v44 }
   0xf   :  { %152 = vadd.xlane.f32.xlu0 %v151_v35  ;;  %v109_v35 = vmul.f32 %v1507_v26, %v1507_v26  ;;  %v181_v37 = vadd.f32 %v104_v25, %v103_v24  ;;  %v111_v56 = vmul.f32 %v1545_v46, %v1545_v46  ;;  %v112_v57 = vmul.f32 %v1550_v47, %v1550_v47  ;;  %v1573_v3 = vld [vmem:[%s2940_s1 + $0x140] sm:$0xff]  ;;  %v1591_v24 = vld [vmem:[%s2940_s1 + $0x170] sm:$0xff]  ;;  %v1596_v25 = vld [vmem:[%s2940_s1 + $0x178] sm:$0xff] }
  0x10   :  { %v115_v22 = vmul.f32 %v1573_v3, %v1573_v3  ;;  %3090 = vst [vmem:[#allocation2_spill] sm:$0xff] %v1591_v24 }
  0x11   :  { %v193_v21 = vadd.f32 %v112_v57, %v111_v56  ;;  %v1629_v56 = vld [vmem:[%s2940_s1 + $0x180] sm:$0xff]  ;;  %v1634_v57 = vld [vmem:[%s2940_s1 + $0x188] sm:$0xff] }
  0x12   :  { %161 = vadd.xlane.f32.xlu1 %v160_v42  ;;  %v107_v42 = vmul.f32 %v1517_v32, %v1517_v32  ;;  %3094 = vst [vmem:[#allocation6_spill] sm:$0xff] %v1629_v56  ;;  %3095 = vst [vmem:[#allocation7_spill] sm:$0xff] %v1634_v57 }
  0x13   :  { %158 = vadd.xlane.f32.xlu0 %v157_v45  ;;  %v1540_v45 = vld [vmem:[%s2940_s1 + $0x138] sm:$0xff] }
  0x14   :  { %v114_v54 = vmul.f32 %v1540_v45, %v1540_v45 }
  0x16   :  { %167 = vadd.xlane.f32.xlu1 %v166_v52  ;;  %v190_v52 = vadd.f32 %v110_v36, %v109_v35  ;;  %v196_v6 = vadd.f32 %v114_v54, %v113_v53  ;;  %v1606_v35 = vld [vmem:[%s2940_s1 + $0x168] sm:$0xff]  ;;  %v1619_v54 = vld [vmem:[%s2940_s1 + $0x190] sm:$0xff] }
  0x17   :  { %164 = vadd.xlane.f32.xlu0 %v163_v55  ;;  %v187_v55 = vadd.f32 %v108_v43, %v107_v42  ;;  %v122_v42 = vmul.f32 %v1596_v25, %v1596_v25  ;;  %v120_v53 = vmul.f32 %v1606_v35, %v1606_v35  ;;  %3092 = vst [vmem:[#allocation4_spill] sm:$0xff] %v1619_v54 }
  0x1a   :  { %173 = vadd.xlane.f32.xlu1 %v172_v62  ;;  %v1563_v62 = vld [vmem:[%s2940_s1 + $0x150] sm:$0xff] }
  0x1b   :  { %170 = vadd.xlane.f32.xlu0 %v169_v4  ;;  %v1578_v4 = vld [vmem:[%s2940_s1 + $0x148] sm:$0xff]  ;;  %v117_v9 = vmul.f32 %v1563_v62, %v1563_v62 }
  0x1e   :  { %179 = vadd.xlane.f32.xlu1 %v178_v17  ;;  %v118_v17 = vmul.f32 %v1568_v63, %v1568_v63 }
  0x1f   :  { %176 = vadd.xlane.f32.xlu0 %v175_v23  ;;  %v116_v23 = vmul.f32 %v1578_v4, %v1578_v4 }
  0x20   :  { %v202_v36 = vadd.f32 %v118_v17, %v117_v9  ;;  %v125_v9 = vmul.f32 %v1619_v54, %v1619_v54 }
  0x21   :  { %v199_v43 = vadd.f32 %v116_v23, %v115_v22  ;;  %v123_v22 = vmul.f32 %v1629_v56, %v1629_v56  ;;  %v124_v23 = vmul.f32 %v1634_v57, %v1634_v57 }
  0x22   :  { %185 = vadd.xlane.f32.xlu1 %v184_v34  ;;  %v1601_v34 = vld [vmem:[%s2940_s1 + $0x160] sm:$0xff] }
  0x23   :  { %182 = vadd.xlane.f32.xlu0 %v181_v37  ;;  %3091 = vst [vmem:[#allocation3_spill] sm:$0xff] %v1601_v34  ;;  %v121_v37 = vmul.f32 %v1591_v24, %v1591_v24  ;;  %v1647_v24 = vld [vmem:[%s2940_s1 + $0x1b0] sm:$0xff]  ;;  %v211_v54 = vadd.f32 %v124_v23, %v123_v22 }
  0x24   :  { %3096 = vst [vmem:[#allocation8_spill] sm:$0xff] %v1647_v24 }
  0x26   :  { %191 = vadd.xlane.f32.xlu1 %v190_v52  ;;  %v119_v52 = vmul.f32 %v1601_v34, %v1601_v34 }
  0x27   :  { %188 = vadd.xlane.f32.xlu0 %v187_v55  ;;  %v1624_v55 = vld [vmem:[%s2940_s1 + $0x198] sm:$0xff] }
  0x28   :  { %3093 = vst [vmem:[#allocation5_spill] sm:$0xff] %v1624_v55  ;;  %v126_v17 = vmul.f32 %v1624_v55, %v1624_v55  ;;  %v1675_v55 = vld [vmem:[%s2940_s1 + $0x1d0] sm:$0xff] }
  0x29   :  { %3100 = vst [vmem:[#allocation12_spill] sm:$0xff] %v1675_v55  ;;  %v133_v22 = vmul.f32 %v1675_v55, %v1675_v55 }
  0x2a   :  { %197 = vadd.xlane.f32.xlu1 %v196_v6  ;;  %v208_v6 = vadd.f32 %v122_v42, %v121_v37  ;;  %v1657_v37 = vld [vmem:[%s2940_s1 + $0x1a0] sm:$0xff]  ;;  %v1662_v42 = vld [vmem:[%s2940_s1 + $0x1a8] sm:$0xff] }
  0x2b   :  { %194 = vadd.xlane.f32.xlu0 %v193_v21  ;;  %v205_v21 = vadd.f32 %v120_v53, %v119_v52  ;;  %3098 = vst [vmem:[#allocation10_spill] sm:$0xff] %v1657_v37  ;;  %3099 = vst [vmem:[#allocation11_spill] sm:$0xff] %v1662_v42  ;;  %v129_v52 = vmul.f32 %v1647_v24, %v1647_v24  ;;  %v127_v56 = vmul.f32 %v1657_v37, %v1657_v37 }
  0x2c   :  { %v128_v57 = vmul.f32 %v1662_v42, %v1662_v42 }
  0x2e   :  { %203 = vadd.xlane.f32.xlu1 %v202_v36  ;;  %v1652_v36 = vld [vmem:[%s2940_s1 + $0x1b8] sm:$0xff]  ;;  %v217_v24 = vadd.f32 %v128_v57, %v127_v56  ;;  %v1718_v56 = vld [vmem:[%s2940_s1 + $0x1e8] sm:$0xff] }
  0x2f   :  { %200 = vadd.xlane.f32.xlu0 %v199_v43  ;;  %3097 = vst [vmem:[#allocation9_spill] sm:$0xff] %v1652_v36  ;;  %v214_v43 = vadd.f32 %v126_v17, %v125_v9  ;;  %v130_v53 = vmul.f32 %v1652_v36, %v1652_v36  ;;  %v1685_v9 = vld [vmem:[%s2940_s1 + $0x1c0] sm:$0xff]  ;;  %v1690_v17 = vld [vmem:[%s2940_s1 + $0x1c8] sm:$0xff]  ;;  %v1703_v36 = vld [vmem:[%s2940_s1 + $0x1f0] sm:$0xff] }
  0x30   :  { %3102 = vst [vmem:[#allocation14_spill] sm:$0xff] %v1685_v9  ;;  %3103 = vst [vmem:[#allocation15_spill] sm:$0xff] %v1690_v17  ;;  %v131_v37 = vmul.f32 %v1685_v9, %v1685_v9  ;;  %v132_v42 = vmul.f32 %v1690_v17, %v1690_v17  ;;  %v136_v17 = vmul.f32 %v1718_v56, %v1718_v56 }
  0x31   :  { %3104 = vst [vmem:[#allocation16_spill] sm:$0xff] %v1703_v36 }
  0x32   :  { %209 = vadd.xlane.f32.xlu1 %v208_v6  ;;  %v1680_v6 = vld [vmem:[%s2940_s1 + $0x1d8] sm:$0xff]  ;;  %v223_v55 = vadd.f32 %v132_v42, %v131_v37 }
  0x33   :  { %206 = vadd.xlane.f32.xlu0 %v205_v21  ;;  %3101 = vst [vmem:[#allocation13_spill] sm:$0xff] %v1680_v6  ;;  %v220_v21 = vadd.f32 %v130_v53, %v129_v52  ;;  %v134_v23 = vmul.f32 %v1680_v6, %v1680_v6  ;;  %v137_v52 = vmul.f32 %v1703_v36, %v1703_v36 }
  0x35   :  { %v226_v57 = vadd.f32 %v134_v23, %v133_v22 }
  0x36   :  { %215 = vadd.xlane.f32.xlu1 %v214_v43  ;;  %v1708_v43 = vld [vmem:[%s2940_s1 + $0x1f8] sm:$0xff] }
  0x37   :  { %212 = vadd.xlane.f32.xlu0 %v211_v54  ;;  %v1713_v54 = vld [vmem:[%s2940_s1 + $0x1e0] sm:$0xff]  ;;  %v138_v53 = vmul.f32 %v1708_v43, %v1708_v43 }
  0x38   :  { %3105 = vst [vmem:[#allocation17_spill] sm:$0xff] %v1713_v54  ;;  %v135_v9 = vmul.f32 %v1713_v54, %v1713_v54 }
  0x39   :  { %v232_v6 = vadd.f32 %v138_v53, %v137_v52 }
  0x3a   :  { %221 = vadd.xlane.f32.xlu1 %v220_v21  ;;  %v229_v34 = vadd.f32 %v136_v17, %v135_v9  ;;  %v364_v21 = vld [vmem:[%s2941_s0 + $0x8] sm:$0xff] }
  0x3b   :  { %218 = vadd.xlane.f32.xlu0 %v217_v24  ;;  %491 = vmatprep.mubr.f32.mxu0 %v364_v21 }
  0x3c   :  { %748 = vmatprep.mubr.f32.mxu1 %v364_v21 }
  0x3e   :  { %227 = vadd.xlane.f32.xlu1 %v226_v57 }
  0x3f   :  { %224 = vadd.xlane.f32.xlu0 %v223_v55 }
  0x42   :  { %233 = vadd.xlane.f32.xlu1 %v232_v6 }
  0x43   :  { %230 = vadd.xlane.f32.xlu0 %v229_v34 }
  0x93   :  { %v147_v24 = vpop.xlane.xlu1 %146 }
  0x94   :  { %v237_v37 = vmax.f32 %v147_v24, 1e-24  ;;  %v141_v42 = vpop.xlane.xlu0 %140 }
  0x95   :  { %v235_v22 = vmax.f32 %v141_v42, 1e-24 }
  0x96   :  { %1201 = vrsqrt.f32 %v237_v37 }
  0x97   :  { %v150_v23 = vpop.xlane.xlu1 %149  ;;  %1203 = vrsqrt.f32 %v235_v22 }
  0x98   :  { %v238_v36 = vmax.f32 %v150_v23, 1e-24  ;;  %v144_v57 = vpop.xlane.xlu0 %143 }
  0x99   :  { %v236_v52 = vmax.f32 %v144_v57, 1e-24 }
  0x9a   :  { %1205 = vrsqrt.f32 %v238_v36 }
  0x9b   :  { %1207 = vrsqrt.f32 %v236_v52  ;;  %v156_v55 = vpop.xlane.xlu1 %155 }
  0x9c   :  { %v240_v34 = vmax.f32 %v156_v55, 1e-24  ;;  %v153_v6 = vpop.xlane.xlu0 %152 }
  0x9d   :  { %v239_v9 = vmax.f32 %v153_v6, 1e-24 }
  0x9e   :  { %1209 = vrsqrt.f32 %v240_v34 }
  0x9f   :  { %1211 = vrsqrt.f32 %v239_v9  ;;  %v162_v17 = vpop.xlane.xlu1 %161 }
  0xa0   :  { %v242_v53 = vmax.f32 %v162_v17, 1e-24  ;;  %v159_v21 = vpop.xlane.xlu0 %158  ;;  %v1202_v24 = vpop.eup %1201 }
  0xa1   :  { %v241_v54 = vmax.f32 %v159_v21, 1e-24  ;;  %v1204_v42 = vpop.eup %1203  ;;  %v1738_v6 = vmul.f32 %v1202_v24, %v1288_v1 }
  0xa2   :  { %1213 = vrsqrt.f32 %v242_v53  ;;  %v1732_v55 = vmul.f32 %v1204_v42, %v1302_v5  ;;  %v1735_v34 = vmul.f32 %v1204_v42, %v1293_v2 }
  0xa3   :  { %1215 = vrsqrt.f32 %v241_v54  ;;  %v168_v37 = vpop.xlane.xlu1 %167  ;;  %3108 = vst [vmem:[#allocation20_spill] sm:$0xff] %v1738_v6 }
  0xa4   :  { %v1206_v22 = vpop.eup %1205  ;;  %v244_v23 = vmax.f32 %v168_v37, 1e-24  ;;  %v165_v57 = vpop.xlane.xlu0 %164  ;;  %3106 = vst [vmem:[#allocation18_spill] sm:$0xff] %v1732_v55  ;;  %3107 = vst [vmem:[#allocation19_spill] sm:$0xff] %v1735_v34 }
  0xa5   :  { %v1208_v36 = vpop.eup %1207  ;;  %v243_v52 = vmax.f32 %v165_v57, 1e-24  ;;  %v1747_v17 = vmul.f32 %v1206_v22, %v1314_v8 }
  0xa6   :  { %1217 = vrsqrt.f32 %v244_v23  ;;  %v1741_v9 = vmul.f32 %v1208_v36, %v1330_v13  ;;  %v1744_v54 = vmul.f32 %v1208_v36, %v1325_v12  ;;  %v1754_v23 = vmul.f32 %v1202_v24, %v1283_v0 }
  0xa7   :  { %3111 = vst [vmem:[#allocation23_spill] sm:$0xff] %v1747_v17  ;;  %1219 = vrsqrt.f32 %v243_v52  ;;  %v174_v53 = vpop.xlane.xlu1 %173  ;;  %v1757_v12 = vmul.f32 %v1206_v22, %v1309_v7  ;;  %v1077_v57 = vpack.c.bf16 %v1747_v17, %v1738_v6  ;;  %v2326_v17 = vld [vmem:[%s2941_s0 + $0x1c0] sm:$0xff]  ;;  %v2338_v6 = vld [vmem:[%s2941_s0 + $0x1d0] sm:$0xff] }
  0xa8   :  { %3109 = vst [vmem:[#allocation21_spill] sm:$0xff] %v1741_v9  ;;  %3110 = vst [vmem:[#allocation22_spill] sm:$0xff] %v1744_v54  ;;  %v1210_v5 = vpop.eup %1209  ;;  %v1073_v2 = vpack.c.bf16 %v1741_v9, %v1732_v55  ;;  %v1075_v1 = vpack.c.bf16 %v1744_v54, %v1735_v34  ;;  %v246_v21 = vmax.f32 %v174_v53, 1e-24  ;;  %v171_v42 = vpop.xlane.xlu0 %170  ;;  %v2350_v9 = vld [vmem:[%s2941_s0 + $0x1e0] sm:$0xff]  ;;  %v2355_v54 = vld [vmem:[%s2941_s0 + $0x1f8] sm:$0xff] }
  0xa9   :  { %v1212_v37 = vpop.eup %1211  ;;  %v245_v13 = vmax.f32 %v171_v42, 1e-24  ;;  %3112 = vst [vmem:[#allocation24_spill] sm:$0xff] %v1754_v23  ;;  %3113 = vst [vmem:[#allocation25_spill] sm:$0xff] %v1757_v12  ;;  %v1760_v8 = vmul.f32 %v1210_v5, %v1344_v18  ;;  %v1771_v7 = vmul.f32 %v1210_v5, %v1335_v14  ;;  %v2362_v55 = vld [vmem:[%s2941_s0 + $0x1f0] sm:$0xff] }
  0xaa   :  { %1074 = vmatprep.subr.bf16.mxu0 %v1073_v2  ;;  %1221 = vrsqrt.f32 %v246_v21  ;;  %v1765_v36 = vmul.f32 %v1212_v37, %v1354_v20  ;;  %v1768_v0 = vmul.f32 %v1212_v37, %v1349_v19  ;;  %v1079_v20 = vpack.c.bf16 %v1757_v12, %v1754_v23  ;;  %3190 = vst [vmem:[#allocation70_spill] sm:$0xff] %v2326_v17  ;;  %v2331_v12 = vld [vmem:[%s2941_s0 + $0x1d8] sm:$0xff]  ;;  %v2343_v23 = vld [vmem:[%s2941_s0 + $0x1e8] sm:$0xff] }
  0xab   :  { %3114 = vst [vmem:[#allocation26_spill] sm:$0xff] %v1760_v8  ;;  %1076 = vmatpush1.bf16.msra.mxu0 %v1075_v1  ;;  %1223 = vrsqrt.f32 %v245_v13  ;;  %v180_v52 = vpop.xlane.xlu1 %179  ;;  %3117 = vst [vmem:[#allocation29_spill] sm:$0xff] %v1771_v7 }
  0xac   :  { %3115 = vst [vmem:[#allocation27_spill] sm:$0xff] %v1765_v36  ;;  %3116 = vst [vmem:[#allocation28_spill] sm:$0xff] %v1768_v0  ;;  %v1214_v24 = vpop.eup %1213  ;;  %1078 = vmatprep.subr.bf16.mxu0 %v1077_v57  ;;  %v248_v18 = vmax.f32 %v180_v52, 1e-24  ;;  %v177_v22 = vpop.xlane.xlu0 %176  ;;  %v1081_v53 = vpack.c.bf16 %v1760_v8, %v1765_v36  ;;  %v1083_v14 = vpack.c.bf16 %v1771_v7, %v1768_v0  ;;  %v2302_v8 = vld [vmem:[%s2941_s0 + $0x1a0] sm:$0xff]  ;;  %v2307_v7 = vld [vmem:[%s2941_s0 + $0x1b8] sm:$0xff] }
  0xad   :  { %v1216_v2 = vpop.eup %1215  ;;  %v247_v1 = vmax.f32 %v177_v22, 1e-24  ;;  %v1778_v21 = vmul.f32 %v1214_v24, %v1372_v29  ;;  %v1789_v37 = vmul.f32 %v1214_v24, %v1367_v28  ;;  %3186 = vst [vmem:[#allocation66_spill] sm:$0xff] %v2302_v8  ;;  %3187 = vst [vmem:[#allocation67_spill] sm:$0xff] %v2307_v7  ;;  %v2314_v36 = vld [vmem:[%s2941_s0 + $0x1b0] sm:$0xff]  ;;  %v2319_v0 = vld [vmem:[%s2941_s0 + $0x1c8] sm:$0xff] }
  0xae   :  { %1225 = vrsqrt.f32 %v248_v18  ;;  %v1781_v19 = vmul.f32 %v1216_v2, %v1382_v31  ;;  %v1786_v42 = vmul.f32 %v1216_v2, %v1377_v30  ;;  %3188 = vst [vmem:[#allocation68_spill] sm:$0xff] %v2314_v36  ;;  %3189 = vst [vmem:[#allocation69_spill] sm:$0xff] %v2319_v0 }
  0xaf   :  { %3118 = vst [vmem:[#allocation30_spill] sm:$0xff] %v1778_v21  ;;  %1080 = vmatpush1.bf16.msra.mxu0 %v1079_v20  ;;  %1227 = vrsqrt.f32 %v247_v1  ;;  %v186_v5 = vpop.xlane.xlu1 %185  ;;  %3121 = vst [vmem:[#allocation33_spill] sm:$0xff] %v1789_v37 }
  0xb0   :  { %3119 = vst [vmem:[#allocation31_spill] sm:$0xff] %v1781_v19  ;;  %3120 = vst [vmem:[#allocation32_spill] sm:$0xff] %v1786_v42  ;;  %v1218_v13 = vpop.eup %1217  ;;  %1082 = vmatprep.subr.bf16.mxu0 %v1081_v53  ;;  %v250_v29 = vmax.f32 %v186_v5, 1e-24  ;;  %v183_v57 = vpop.xlane.xlu0 %182  ;;  %v1085_v31 = vpack.c.bf16 %v1778_v21, %v1781_v19  ;;  %v1087_v28 = vpack.c.bf16 %v1789_v37, %v1786_v42  ;;  %v2278_v21 = vld [vmem:[%s2941_s0 + $0x180] sm:$0xff]  ;;  %v2283_v37 = vld [vmem:[%s2941_s0 + $0x198] sm:$0xff] }
  0xb1   :  { %v1220_v52 = vpop.eup %1219  ;;  %v249_v18 = vmax.f32 %v183_v57, 1e-24  ;;  %v1794_v22 = vmul.f32 %v1218_v13, %v1400_v39  ;;  %v1805_v53 = vmul.f32 %v1218_v13, %v1395_v38  ;;  %v2290_v19 = vld [vmem:[%s2941_s0 + $0x190] sm:$0xff]  ;;  %v2295_v42 = vld [vmem:[%s2941_s0 + $0x1a8] sm:$0xff]  ;;  %3191 = vst [vmem:[#allocation71_spill] sm:$0xff] %v2331_v12  ;;  %3192 = vst [vmem:[#allocation72_spill] sm:$0xff] %v2338_v6 }
  0xb2   :  { %1229 = vrsqrt.f32 %v250_v29  ;;  %v1797_v20 = vmul.f32 %v1220_v52, %v1410_v41  ;;  %v1802_v24 = vmul.f32 %v1220_v52, %v1405_v40  ;;  %3193 = vst [vmem:[#allocation73_spill] sm:$0xff] %v2343_v23  ;;  %3194 = vst [vmem:[#allocation74_spill] sm:$0xff] %v2350_v9 }
  0xb3   :  { %3122 = vst [vmem:[#allocation34_spill] sm:$0xff] %v1794_v22  ;;  %1084 = vmatpush1.bf16.msra.mxu0 %v1083_v14  ;;  %1231 = vrsqrt.f32 %v249_v18  ;;  %v192_v30 = vpop.xlane.xlu1 %191  ;;  %3125 = vst [vmem:[#allocation37_spill] sm:$0xff] %v1805_v53 }
  0xb4   :  { %3123 = vst [vmem:[#allocation35_spill] sm:$0xff] %v1797_v20  ;;  %3124 = vst [vmem:[#allocation36_spill] sm:$0xff] %v1802_v24  ;;  %v1222_v2 = vpop.eup %1221  ;;  %1086 = vmatprep.subr.bf16.mxu0 %v1085_v31  ;;  %v252_v39 = vmax.f32 %v192_v30, 1e-24  ;;  %v189_v1 = vpop.xlane.xlu0 %188  ;;  %v1089_v41 = vpack.c.bf16 %v1794_v22, %v1797_v20  ;;  %v1091_v38 = vpack.c.bf16 %v1805_v53, %v1802_v24  ;;  %v2254_v22 = vld [vmem:[%s2941_s0 + $0x160] sm:$0xff]  ;;  %v2259_v53 = vld [vmem:[%s2941_s0 + $0x178] sm:$0xff] }
  0xb5   :  { %v1224_v5 = vpop.eup %1223  ;;  %v251_v14 = vmax.f32 %v189_v1, 1e-24  ;;  %v1810_v29 = vmul.f32 %v1222_v2, %v1428_v49  ;;  %v1821_v31 = vmul.f32 %v1222_v2, %v1423_v48  ;;  %v2266_v20 = vld [vmem:[%s2941_s0 + $0x170] sm:$0xff]  ;;  %v2271_v24 = vld [vmem:[%s2941_s0 + $0x188] sm:$0xff]  ;;  %3195 = vst [vmem:[#allocation75_spill] sm:$0xff] %v2355_v54  ;;  %3196 = vst [vmem:[#allocation76_spill] sm:$0xff] %v2362_v55 }
  0xb6   :  { %1233 = vrsqrt.f32 %v252_v39  ;;  %v1813_v57 = vmul.f32 %v1224_v5, %v1438_v51  ;;  %v1818_v13 = vmul.f32 %v1224_v5, %v1433_v50 }
  0xb7   :  { %3126 = vst [vmem:[#allocation38_spill] sm:$0xff] %v1810_v29  ;;  %1088 = vmatpush1.bf16.msra.mxu0 %v1087_v28  ;;  %1235 = vrsqrt.f32 %v251_v14  ;;  %v198_v40 = vpop.xlane.xlu1 %197  ;;  %3129 = vst [vmem:[#allocation41_spill] sm:$0xff] %v1821_v31 }
  0xb8   :  { %3127 = vst [vmem:[#allocation39_spill] sm:$0xff] %v1813_v57  ;;  %3128 = vst [vmem:[#allocation40_spill] sm:$0xff] %v1818_v13  ;;  %v1226_v52 = vpop.eup %1225  ;;  %1090 = vmatprep.subr.bf16.mxu0 %v1089_v41  ;;  %v254_v49 = vmax.f32 %v198_v40, 1e-24  ;;  %v195_v18 = vpop.xlane.xlu0 %194  ;;  %v1093_v51 = vpack.c.bf16 %v1810_v29, %v1813_v57  ;;  %v1095_v48 = vpack.c.bf16 %v1821_v31, %v1818_v13  ;;  %v2230_v29 = vld [vmem:[%s2941_s0 + $0x140] sm:$0xff]  ;;  %v2235_v31 = vld [vmem:[%s2941_s0 + $0x158] sm:$0xff] }
  0xb9   :  { %v1228_v30 = vpop.eup %1227  ;;  %v253_v28 = vmax.f32 %v195_v18, 1e-24  ;;  %v1826_v39 = vmul.f32 %v1226_v52, %v1456_v59  ;;  %v1837_v41 = vmul.f32 %v1226_v52, %v1451_v58  ;;  %v2242_v57 = vld [vmem:[%s2941_s0 + $0x150] sm:$0xff]  ;;  %v2247_v13 = vld [vmem:[%s2941_s0 + $0x168] sm:$0xff] }
  0xba   :  { %1237 = vrsqrt.f32 %v254_v49  ;;  %v1829_v1 = vmul.f32 %v1228_v30, %v1466_v61  ;;  %v1834_v2 = vmul.f32 %v1228_v30, %v1461_v60 }
  0xbb   :  { %3130 = vst [vmem:[#allocation42_spill] sm:$0xff] %v1826_v39  ;;  %1092 = vmatpush1.bf16.msra.mxu0 %v1091_v38  ;;  %1239 = vrsqrt.f32 %v253_v28  ;;  %v204_v50 = vpop.xlane.xlu1 %203  ;;  %3133 = vst [vmem:[#allocation45_spill] sm:$0xff] %v1837_v41 }
  0xbc   :  { %3131 = vst [vmem:[#allocation43_spill] sm:$0xff] %v1829_v1  ;;  %3132 = vst [vmem:[#allocation44_spill] sm:$0xff] %v1834_v2  ;;  %v1230_v5 = vpop.eup %1229  ;;  %1094 = vmatprep.subr.bf16.mxu0 %v1093_v51  ;;  %v256_v59 = vmax.f32 %v204_v50, 1e-24  ;;  %v201_v14 = vpop.xlane.xlu0 %200  ;;  %v1097_v61 = vpack.c.bf16 %v1826_v39, %v1829_v1  ;;  %v1099_v58 = vpack.c.bf16 %v1837_v41, %v1834_v2  ;;  %v2206_v39 = vld [vmem:[%s2941_s0 + $0x120] sm:$0xff]  ;;  %v2211_v41 = vld [vmem:[%s2941_s0 + $0x138] sm:$0xff] }
  0xbd   :  { %v1232_v40 = vpop.eup %1231  ;;  %v255_v38 = vmax.f32 %v201_v14, 1e-24  ;;  %v1842_v49 = vmul.f32 %v1230_v5, %v1484_v11  ;;  %v1853_v51 = vmul.f32 %v1230_v5, %v1479_v10  ;;  %v2218_v1 = vld [vmem:[%s2941_s0 + $0x130] sm:$0xff]  ;;  %v2223_v2 = vld [vmem:[%s2941_s0 + $0x148] sm:$0xff] }
  0xbe   :  { %1241 = vrsqrt.f32 %v256_v59  ;;  %v1845_v18 = vmul.f32 %v1232_v40, %v1494_v16  ;;  %v1850_v52 = vmul.f32 %v1232_v40, %v1489_v15 }
  0xbf   :  { %3134 = vst [vmem:[#allocation46_spill] sm:$0xff] %v1842_v49  ;;  %1096 = vmatpush1.bf16.msra.mxu0 %v1095_v48  ;;  %1243 = vrsqrt.f32 %v255_v38  ;;  %v210_v60 = vpop.xlane.xlu1 %209  ;;  %3137 = vst [vmem:[#allocation49_spill] sm:$0xff] %v1853_v51 }
  0xc0   :  { %3135 = vst [vmem:[#allocation47_spill] sm:$0xff] %v1845_v18  ;;  %3136 = vst [vmem:[#allocation48_spill] sm:$0xff] %v1850_v52  ;;  %v1234_v30 = vpop.eup %1233  ;;  %1098 = vmatprep.subr.bf16.mxu0 %v1097_v61  ;;  %v258_v11 = vmax.f32 %v210_v60, 1e-24  ;;  %v207_v28 = vpop.xlane.xlu0 %206  ;;  %v1101_v16 = vpack.c.bf16 %v1842_v49, %v1845_v18  ;;  %v1103_v10 = vpack.c.bf16 %v1853_v51, %v1850_v52  ;;  %v2182_v49 = vld [vmem:[%s2941_s0 + $0x100] sm:$0xff]  ;;  %v2187_v51 = vld [vmem:[%s2941_s0 + $0x118] sm:$0xff] }
  0xc1   :  { %v1236_v50 = vpop.eup %1235  ;;  %v257_v48 = vmax.f32 %v207_v28, 1e-24  ;;  %v1858_v59 = vmul.f32 %v1234_v30, %v1512_v27  ;;  %v1869_v61 = vmul.f32 %v1234_v30, %v1507_v26  ;;  %v2194_v18 = vld [vmem:[%s2941_s0 + $0x110] sm:$0xff]  ;;  %v2199_v52 = vld [vmem:[%s2941_s0 + $0x128] sm:$0xff] }
  0xc2   :  { %1245 = vrsqrt.f32 %v258_v11  ;;  %v1861_v14 = vmul.f32 %v1236_v50, %v1522_v33  ;;  %v1866_v5 = vmul.f32 %v1236_v50, %v1517_v32 }
  0xc3   :  { %3138 = vst [vmem:[#allocation50_spill] sm:$0xff] %v1858_v59  ;;  %1100 = vmatpush1.bf16.msra.mxu0 %v1099_v58  ;;  %1247 = vrsqrt.f32 %v257_v48  ;;  %v216_v15 = vpop.xlane.xlu1 %215  ;;  %3141 = vst [vmem:[#allocation53_spill] sm:$0xff] %v1869_v61 }
  0xc4   :  { %3139 = vst [vmem:[#allocation51_spill] sm:$0xff] %v1861_v14  ;;  %3140 = vst [vmem:[#allocation52_spill] sm:$0xff] %v1866_v5  ;;  %v1238_v40 = vpop.eup %1237  ;;  %1102 = vmatprep.subr.bf16.mxu0 %v1101_v16  ;;  %v260_v27 = vmax.f32 %v216_v15, 1e-24  ;;  %v213_v38 = vpop.xlane.xlu0 %212  ;;  %v1105_v33 = vpack.c.bf16 %v1858_v59, %v1861_v14  ;;  %v1107_v26 = vpack.c.bf16 %v1869_v61, %v1866_v5  ;;  %v2158_v59 = vld [vmem:[%s2941_s0 + $0xe0] sm:$0xff]  ;;  %v2163_v61 = vld [vmem:[%s2941_s0 + $0xf8] sm:$0xff] }
  0xc5   :  { %v1240_v60 = vpop.eup %1239  ;;  %v259_v58 = vmax.f32 %v213_v38, 1e-24  ;;  %v1874_v11 = vmul.f32 %v1238_v40, %v1540_v45  ;;  %v1885_v16 = vmul.f32 %v1238_v40, %v1535_v44  ;;  %v2170_v14 = vld [vmem:[%s2941_s0 + $0xf0] sm:$0xff]  ;;  %v2175_v5 = vld [vmem:[%s2941_s0 + $0x108] sm:$0xff] }
  0xc6   :  { %1249 = vrsqrt.f32 %v260_v27  ;;  %v1877_v28 = vmul.f32 %v1240_v60, %v1550_v47  ;;  %v1882_v30 = vmul.f32 %v1240_v60, %v1545_v46 }
  0xc7   :  { %3142 = vst [vmem:[#allocation54_spill] sm:$0xff] %v1874_v11  ;;  %1104 = vmatpush1.bf16.msra.mxu0 %v1103_v10  ;;  %1251 = vrsqrt.f32 %v259_v58  ;;  %v222_v32 = vpop.xlane.xlu1 %221  ;;  %3145 = vst [vmem:[#allocation57_spill] sm:$0xff] %v1885_v16 }
  0xc8   :  { %3143 = vst [vmem:[#allocation55_spill] sm:$0xff] %v1877_v28  ;;  %3144 = vst [vmem:[#allocation56_spill] sm:$0xff] %v1882_v30  ;;  %v1242_v50 = vpop.eup %1241  ;;  %1106 = vmatprep.subr.bf16.mxu0 %v1105_v33  ;;  %v262_v45 = vmax.f32 %v222_v32, 1e-24  ;;  %v219_v48 = vpop.xlane.xlu0 %218  ;;  %v1109_v47 = vpack.c.bf16 %v1874_v11, %v1877_v28  ;;  %v1111_v44 = vpack.c.bf16 %v1885_v16, %v1882_v30  ;;  %v2134_v11 = vld [vmem:[%s2941_s0 + $0xc0] sm:$0xff]  ;;  %v2139_v16 = vld [vmem:[%s2941_s0 + $0xd8] sm:$0xff] }
  0xc9   :  { %v1244_v15 = vpop.eup %1243  ;;  %v261_v10 = vmax.f32 %v219_v48, 1e-24  ;;  %v1890_v27 = vmul.f32 %v1242_v50, %v1568_v63  ;;  %v1901_v33 = vmul.f32 %v1242_v50, %v1563_v62  ;;  %v3152_v50 = vld [vmem:[#allocation3_spill] sm:$0xff]  ;;  %v2146_v28 = vld [vmem:[%s2941_s0 + $0xd0] sm:$0xff] }
  0xca   :  { %1253 = vrsqrt.f32 %v262_v45  ;;  %v1893_v38 = vmul.f32 %v1244_v15, %v1578_v4  ;;  %v1898_v40 = vmul.f32 %v1244_v15, %v1573_v3  ;;  %v3154_v15 = vld [vmem:[#allocation2_spill] sm:$0xff]  ;;  %v2151_v30 = vld [vmem:[%s2941_s0 + $0xe8] sm:$0xff] }
  0xcb   :  { %3146 = vst [vmem:[#allocation58_spill] sm:$0xff] %v1890_v27  ;;  %1108 = vmatpush1.bf16.msra.mxu0 %v1107_v26  ;;  %1255 = vrsqrt.f32 %v261_v10  ;;  %v228_v46 = vpop.xlane.xlu1 %227  ;;  %3149 = vst [vmem:[#allocation61_spill] sm:$0xff] %v1901_v33 }
  0xcc   :  { %3147 = vst [vmem:[#allocation59_spill] sm:$0xff] %v1893_v38  ;;  %3148 = vst [vmem:[#allocation60_spill] sm:$0xff] %v1898_v40  ;;  %v1246_v60 = vpop.eup %1245  ;;  %1110 = vmatprep.subr.bf16.mxu0 %v1109_v47  ;;  %v264_v63 = vmax.f32 %v228_v46, 1e-24  ;;  %v225_v58 = vpop.xlane.xlu0 %224  ;;  %v1113_v4 = vpack.c.bf16 %v1890_v27, %v1893_v38  ;;  %v1115_v62 = vpack.c.bf16 %v1901_v33, %v1898_v40  ;;  %v3158_v33 = vld [vmem:[#allocation7_spill] sm:$0xff] }
  0xcd   :  { %v1248_v32 = vpop.eup %1247  ;;  %v263_v26 = vmax.f32 %v225_v58, 1e-24  ;;  %v1906_v45 = vmul.f32 %v1246_v60, %v1596_v25  ;;  %v1917_v10 = vmul.f32 %v1246_v60, %v3154_v15  ;;  %v2127_v40 = vld [vmem:[%s2941_s0 + $0xc8] sm:$0xff] }
  0xce   :  { %1257 = vrsqrt.f32 %v264_v63  ;;  %v1909_v48 = vmul.f32 %v1248_v32, %v1606_v35  ;;  %v1914_v47 = vmul.f32 %v1248_v32, %v3152_v50 }
  0xcf   :  { %3150 = vst [vmem:[#allocation62_spill] sm:$0xff] %v1906_v45  ;;  %1112 = vmatpush1.bf16.msra.mxu0 %v1111_v44  ;;  %1259 = vrsqrt.f32 %v263_v26  ;;  %v234_v3 = vpop.xlane.xlu1 %233  ;;  %3155 = vst [vmem:[#allocation2_spill] sm:$0xff] %v1917_v10  ;;  %v3156_v26 = vld [vmem:[#allocation5_spill] sm:$0xff] }
  0xd0   :  { %3151 = vst [vmem:[#allocation63_spill] sm:$0xff] %v1909_v48  ;;  %3153 = vst [vmem:[#allocation3_spill] sm:$0xff] %v1914_v47  ;;  %v1250_v46 = vpop.eup %1249  ;;  %1114 = vmatprep.subr.bf16.mxu0 %v1113_v4  ;;  %v266_v25 = vmax.f32 %v234_v3, 1e-24  ;;  %v231_v58 = vpop.xlane.xlu0 %230  ;;  %v1117_v35 = vpack.c.bf16 %v1906_v45, %v1909_v48  ;;  %v1119_v60 = vpack.c.bf16 %v1917_v10, %v1914_v47  ;;  %v3160_v4 = vld [vmem:[#allocation6_spill] sm:$0xff]  ;;  %v3162_v3 = vld [vmem:[#allocation4_spill] sm:$0xff] }
  0xd1   :  { %v1252_v63 = vpop.eup %1251  ;;  %v265_v44 = vmax.f32 %v231_v58, 1e-24  ;;  %v1922_v27 = vmul.f32 %v1250_v46, %v3156_v26  ;;  %v1933_v50 = vmul.f32 %v1250_v46, %v3162_v3  ;;  %v3164_v26 = vld [vmem:[#allocation9_spill] sm:$0xff]  ;;  %v3170_v46 = vld [vmem:[#allocation8_spill] sm:$0xff] }
  0xd2   :  { %1261 = vrsqrt.f32 %v266_v25  ;;  %v1925_v38 = vmul.f32 %v1252_v63, %v3158_v33  ;;  %v1930_v32 = vmul.f32 %v1252_v63, %v3160_v4  ;;  %v3168_v4 = vld [vmem:[#allocation10_spill] sm:$0xff]  ;;  %v2115_v48 = vld [vmem:[%s2941_s0 + $0xb8] sm:$0xff]  ;;  %v2122_v47 = vld [vmem:[%s2941_s0 + $0xb0] sm:$0xff] }
  0xd3   :  { %3157 = vst [vmem:[#allocation5_spill] sm:$0xff] %v1922_v27  ;;  %1116 = vmatpush1.bf16.msra.mxu0 %v1115_v62  ;;  %1263 = vrsqrt.f32 %v265_v44  ;;  %3163 = vst [vmem:[#allocation4_spill] sm:$0xff] %v1933_v50  ;;  %v3166_v62 = vld [vmem:[#allocation11_spill] sm:$0xff] }
  0xd4   :  { %3159 = vst [vmem:[#allocation7_spill] sm:$0xff] %v1925_v38  ;;  %3161 = vst [vmem:[#allocation6_spill] sm:$0xff] %v1930_v32  ;;  %v1254_v15 = vpop.eup %1253  ;;  %1118 = vmatprep.subr.bf16.mxu0 %v1117_v35  ;;  %v1121_v58 = vpack.c.bf16 %v1922_v27, %v1925_v38  ;;  %v1123_v63 = vpack.c.bf16 %v1933_v50, %v1930_v32  ;;  %v3172_v38 = vld [vmem:[#allocation13_spill] sm:$0xff]  ;;  %v2110_v32 = vld [vmem:[%s2941_s0 + $0xa0] sm:$0xff] }
  0xd5   :  { %v1256_v25 = vpop.eup %1255  ;;  %v1938_v33 = vmul.f32 %v1254_v15, %v3164_v26  ;;  %v1949_v3 = vmul.f32 %v1254_v15, %v3170_v46  ;;  %v3178_v15 = vld [vmem:[#allocation12_spill] sm:$0xff] }
  0xd6   :  { %v1941_v44 = vmul.f32 %v1256_v25, %v3166_v62  ;;  %v1946_v45 = vmul.f32 %v1256_v25, %v3168_v4  ;;  %v3174_v62 = vld [vmem:[#allocation15_spill] sm:$0xff]  ;;  %v3176_v4 = vld [vmem:[#allocation14_spill] sm:$0xff] }
  0xd7   :  { %3165 = vst [vmem:[#allocation9_spill] sm:$0xff] %v1938_v33  ;;  %1120 = vmatpush1.bf16.msra.mxu0 %v1119_v60  ;;  %3171 = vst [vmem:[#allocation8_spill] sm:$0xff] %v1949_v3 }
  0xd8   :  { %3167 = vst [vmem:[#allocation11_spill] sm:$0xff] %v1941_v44  ;;  %3169 = vst [vmem:[#allocation10_spill] sm:$0xff] %v1946_v45  ;;  %v1258_v35 = vpop.eup %1257  ;;  %1122 = vmatprep.subr.bf16.mxu0 %v1121_v58  ;;  %v1125_v27 = vpack.c.bf16 %v1938_v33, %v1941_v44  ;;  %v1127_v25 = vpack.c.bf16 %v1949_v3, %v1946_v45  ;;  %v2098_v3 = vld [vmem:[%s2941_s0 + $0x90] sm:$0xff]  ;;  %v2103_v45 = vld [vmem:[%s2941_s0 + $0xa8] sm:$0xff] }
  0xd9   :  { %v1260_v26 = vpop.eup %1259  ;;  %v1954_v10 = vmul.f32 %v1258_v35, %v3172_v38  ;;  %v1965_v46 = vmul.f32 %v1258_v35, %v3178_v15  ;;  %v3184_v35 = vld [vmem:[#allocation16_spill] sm:$0xff] }
  0xda   :  { %v1957_v60 = vmul.f32 %v1260_v26, %v3174_v62  ;;  %v1962_v50 = vmul.f32 %v1260_v26, %v3176_v4  ;;  %v3182_v62 = vld [vmem:[#allocation17_spill] sm:$0xff] }
  0xdb   :  { %3173 = vst [vmem:[#allocation13_spill] sm:$0xff] %v1954_v10  ;;  %1124 = vmatpush1.bf16.msra.mxu0 %v1123_v63  ;;  %3179 = vst [vmem:[#allocation12_spill] sm:$0xff] %v1965_v46 }
  0xdc   :  { %3175 = vst [vmem:[#allocation15_spill] sm:$0xff] %v1957_v60  ;;  %3177 = vst [vmem:[#allocation14_spill] sm:$0xff] %v1962_v50  ;;  %v1262_v58 = vpop.eup %1261  ;;  %1126 = vmatprep.subr.bf16.mxu0 %v1125_v27  ;;  %v1129_v33 = vpack.c.bf16 %v1954_v10, %v1957_v60  ;;  %v1131_v26 = vpack.c.bf16 %v1965_v46, %v1962_v50  ;;  %v2074_v10 = vld [vmem:[%s2941_s0 + $0x70] sm:$0xff]  ;;  %v2079_v46 = vld [vmem:[%s2941_s0 + $0x88] sm:$0xff] }
  0xdd   :  { %v1264_v38 = vpop.eup %1263  ;;  %v1970_v44 = vmul.f32 %v1262_v58, %v1708_v43  ;;  %v1981_v15 = vmul.f32 %v1262_v58, %v3184_v35  ;;  %v2007_v58 = vld [vmem:[%s2941_s0 + $0x28] sm:$0xff]  ;;  %v2086_v60 = vld [vmem:[%s2941_s0 + $0x80] sm:$0xff]  ;;  %v2091_v50 = vld [vmem:[%s2941_s0 + $0x98] sm:$0xff] }
  0xde   :  { %v1973_v63 = vmul.f32 %v1264_v38, %v1718_v56  ;;  %v1978_v4 = vmul.f32 %v1264_v38, %v3182_v62  ;;  %v1990_v56 = vld [vmem:[%s2941_s0] sm:$0xff]  ;;  %v2026_v62 = vld [vmem:[%s2941_s0 + $0x30] sm:$0xff]  ;;  %v2031_v35 = vld [vmem:[%s2941_s0 + $0x48] sm:$0xff] }
  0xdf   :  { %3180 = vst [vmem:[#allocation64_spill] sm:$0xff] %v1970_v44  ;;  %1128 = vmatpush1.bf16.msra.mxu0 %v1127_v25  ;;  %3185 = vst [vmem:[#allocation16_spill] sm:$0xff] %v1981_v15  ;;  %v1995_v25 = vld [vmem:[%s2941_s0 + $0x18] sm:$0xff]  ;;  %v2014_v38 = vld [vmem:[%s2941_s0 + $0x20] sm:$0xff] }
  0xe0   :  { %3181 = vst [vmem:[#allocation65_spill] sm:$0xff] %v1973_v63  ;;  %3183 = vst [vmem:[#allocation17_spill] sm:$0xff] %v1978_v4  ;;  %1130 = vmatprep.subr.bf16.mxu0 %v1129_v33  ;;  %v1133_v27 = vpack.c.bf16 %v1970_v44, %v1973_v63  ;;  %v1135_v43 = vpack.c.bf16 %v1981_v15, %v1978_v4  ;;  %v2002_v33 = vld [vmem:[%s2941_s0 + $0x10] sm:$0xff]  ;;  %v2055_v15 = vld [vmem:[%s2941_s0 + $0x68] sm:$0xff] }
  0xe1   :  { %v2050_v44 = vld [vmem:[%s2941_s0 + $0x50] sm:$0xff]  ;;  %v2062_v63 = vld [vmem:[%s2941_s0 + $0x60] sm:$0xff]  ;;  %v2067_v4 = vld [vmem:[%s2941_s0 + $0x78] sm:$0xff] }
  0xe3   :  { %1132 = vmatpush1.bf16.msra.mxu0 %v1131_v26  ;;  %v2019_v26 = vld [vmem:[%s2941_s0 + $0x38] sm:$0xff] }
  0xe4   :  { %1134 = vmatprep.subr.bf16.mxu0 %v1133_v27  ;;  %v2038_v27 = vld [vmem:[%s2941_s0 + $0x40] sm:$0xff] }
  0xe7   :  { %1136 = vmatpush1.bf16.msra.mxu0 %v1135_v43  ;;  %v2043_v43 = vld [vmem:[%s2941_s0 + $0x58] sm:$0xff] }
  0xea   :  { %492 = vmatmul.mubr.f32.vlgmr.msra.gmra.mrb[0].mxu0 %v1990_v56 }
  0xeb   :  { %497 = vmatprep.mubr.f32.mxu0 %v1995_v25 }
  0xee   :  { %498 = vmatmul.mubr.f32.gmra.mrb[2].mxu0 %v2002_v33 }
  0xef   :  { %503 = vmatprep.mubr.f32.mxu0 %v2007_v58 }
  0xf2   :  { %504 = vmatmul.mubr.f32.gmra.mrb[4].mxu0 %v2014_v38 }
  0xf3   :  { %509 = vmatprep.mubr.f32.mxu0 %v2019_v26 }
  0xf6   :  { %510 = vmatmul.mubr.f32.gmra.mrb[6].mxu0 %v2026_v62 }
  0xf7   :  { %515 = vmatprep.mubr.f32.mxu0 %v2031_v35 }
  0xfa   :  { %516 = vmatmul.mubr.f32.gmra.mrb[8].mxu0 %v2038_v27 }
  0xfb   :  { %521 = vmatprep.mubr.f32.mxu0 %v2043_v43 }
  0xfe   :  { %522 = vmatmul.mubr.f32.gmra.mrb[10].mxu0 %v2050_v44 }
  0xff   :  { %527 = vmatprep.mubr.f32.mxu0 %v2055_v15 }
 0x102   :  { %528 = vmatmul.mubr.f32.gmra.mrb[12].mxu0 %v2062_v63 }
 0x103   :  { %533 = vmatprep.mubr.f32.mxu0 %v2067_v4 }
 0x106   :  { %534 = vmatmul.mubr.f32.gmra.mrb[14].mxu0 %v2074_v10 }
 0x107   :  { %539 = vmatprep.mubr.f32.mxu0 %v2079_v46 }
 0x10a   :  { %540 = vmatmul.mubr.f32.gmra.mrb[16].mxu0 %v2086_v60 }
 0x10b   :  { %545 = vmatprep.mubr.f32.mxu0 %v2091_v50 }
 0x10e   :  { %546 = vmatmul.mubr.f32.gmra.mrb[18].mxu0 %v2098_v3 }
 0x10f   :  { %551 = vmatprep.mubr.f32.mxu0 %v2103_v45 }
 0x112   :  { %552 = vmatmul.mubr.f32.gmra.mrb[20].mxu0 %v2110_v32 }
 0x113   :  { %557 = vmatprep.mubr.f32.mxu0 %v2115_v48 }
 0x116   :  { %558 = vmatmul.mubr.f32.gmra.mrb[22].mxu0 %v2122_v47 }
 0x117   :  { %563 = vmatprep.mubr.f32.mxu0 %v2127_v40 }
 0x11a   :  { %564 = vmatmul.mubr.f32.gmra.mrb[24].mxu0 %v2134_v11 }
 0x11b   :  { %569 = vmatprep.mubr.f32.mxu0 %v2139_v16 }
 0x11e   :  { %570 = vmatmul.mubr.f32.gmra.mrb[26].mxu0 %v2146_v28 }
 0x11f   :  { %575 = vmatprep.mubr.f32.mxu0 %v2151_v30 }
 0x122   :  { %576 = vmatmul.mubr.f32.gmra.mrb[28].mxu0 %v2158_v59 }
 0x123   :  { %581 = vmatprep.mubr.f32.mxu0 %v2163_v61 }
 0x126   :  { %582 = vmatmul.mubr.f32.gmra.mrb[30].mxu0 %v2170_v14 }
 0x127   :  { %587 = vmatprep.mubr.f32.mxu0 %v2175_v5 }
 0x12a   :  { %588 = vmatmul.mubr.f32.gmra.mrb[32].mxu0 %v2182_v49 }
 0x12b   :  { %593 = vmatprep.mubr.f32.mxu0 %v2187_v51 }
 0x12e   :  { %594 = vmatmul.mubr.f32.gmra.mrb[34].mxu0 %v2194_v18 }
 0x12f   :  { %599 = vmatprep.mubr.f32.mxu0 %v2199_v52 }
 0x132   :  { %600 = vmatmul.mubr.f32.gmra.mrb[36].mxu0 %v2206_v39 }
 0x133   :  { %605 = vmatprep.mubr.f32.mxu0 %v2211_v41 }
 0x136   :  { %606 = vmatmul.mubr.f32.gmra.mrb[38].mxu0 %v2218_v1 }
 0x137   :  { %611 = vmatprep.mubr.f32.mxu0 %v2223_v2 }
 0x13a   :  { %612 = vmatmul.mubr.f32.gmra.mrb[40].mxu0 %v2230_v29 }
 0x13b   :  { %617 = vmatprep.mubr.f32.mxu0 %v2235_v31 }
 0x13e   :  { %618 = vmatmul.mubr.f32.gmra.mrb[42].mxu0 %v2242_v57 }
 0x13f   :  { %623 = vmatprep.mubr.f32.mxu0 %v2247_v13 }
 0x142   :  { %624 = vmatmul.mubr.f32.gmra.mrb[44].mxu0 %v2254_v22 }
 0x143   :  { %629 = vmatprep.mubr.f32.mxu0 %v2259_v53 }
 0x146   :  { %630 = vmatmul.mubr.f32.gmra.mrb[46].mxu0 %v2266_v20 }
 0x147   :  { %635 = vmatprep.mubr.f32.mxu0 %v2271_v24 }
 0x14a   :  { %636 = vmatmul.mubr.f32.gmra.mrb[48].mxu0 %v2278_v21 }
 0x14b   :  { %641 = vmatprep.mubr.f32.mxu0 %v2283_v37 }
 0x14e   :  { %642 = vmatmul.mubr.f32.gmra.mrb[50].mxu0 %v2290_v19 }
 0x14f   :  { %647 = vmatprep.mubr.f32.mxu0 %v2295_v42 }
 0x152   :  { %648 = vmatmul.mubr.f32.gmra.mrb[52].mxu0 %v2302_v8 }
 0x153   :  { %653 = vmatprep.mubr.f32.mxu0 %v2307_v7 }
 0x156   :  { %654 = vmatmul.mubr.f32.gmra.mrb[54].mxu0 %v2314_v36 }
 0x157   :  { %659 = vmatprep.mubr.f32.mxu0 %v2319_v0 }
 0x15a   :  { %660 = vmatmul.mubr.f32.gmra.mrb[56].mxu0 %v2326_v17 }
 0x15b   :  { %665 = vmatprep.mubr.f32.mxu0 %v2331_v12 }
 0x15e   :  { %666 = vmatmul.mubr.f32.gmra.mrb[58].mxu0 %v2338_v6 }
 0x15f   :  { %671 = vmatprep.mubr.f32.mxu0 %v2343_v23 }
 0x162   :  { %672 = vmatmul.mubr.f32.gmra.mrb[60].mxu0 %v2350_v9 }
 0x163   :  { %677 = vmatprep.mubr.f32.mxu0 %v2355_v54 }
 0x166   :  { %678 = vmatmul.mubr.f32.gmra.mrb[62].mxu0 %v2362_v55 }
 0x1bd   :  { %v2365_v34 = vpop.f32.mrb[0].mxu0 }
 0x1be   :  { %v2367_v23 = vpop.f32.mrb[1].mxu0 }
 0x1bf   :  { %3197 = vst [vmem:[#allocation77_spill] sm:$0xff] %v2367_v23 }
 0x1c1   :  { %v2369_v6 = vpop.f32.mrb[2].mxu0 }
 0x1c2   :  { %3198 = vst [vmem:[#allocation78_spill] sm:$0xff] %v2369_v6  ;;  %v2371_v12 = vpop.f32.mrb[3].mxu0  ;;  %v1139_v9 = vpack.c.bf16 %v2369_v6, %v2365_v34 }
 0x1c3   :  { %3199 = vst [vmem:[#allocation79_spill] sm:$0xff] %v2371_v12  ;;  %v1137_v54 = vpack.c.bf16 %v2371_v12, %v2367_v23 }
 0x1c5   :  { %v2377_v17 = vpop.f32.mrb[4].mxu0  ;;  %1138 = vmatprep.subr.bf16.mxu1 %v1137_v54 }
 0x1c6   :  { %3200 = vst [vmem:[#allocation80_spill] sm:$0xff] %v2377_v17  ;;  %v2379_v0 = vpop.f32.mrb[5].mxu0  ;;  %1140 = vmatpush1.bf16.msra.mxu1 %v1139_v9 }
 0x1c7   :  { %3201 = vst [vmem:[#allocation81_spill] sm:$0xff] %v2379_v0 }
 0x1c9   :  { %v2381_v55 = vpop.f32.mrb[6].mxu0 }
 0x1ca   :  { %3202 = vst [vmem:[#allocation82_spill] sm:$0xff] %v2381_v55  ;;  %v1143_v36 = vpack.c.bf16 %v2381_v55, %v2377_v17  ;;  %v2385_v7 = vpop.f32.mrb[7].mxu0 }
 0x1cb   :  { %3203 = vst [vmem:[#allocation83_spill] sm:$0xff] %v2385_v7  ;;  %v1141_v8 = vpack.c.bf16 %v2385_v7, %v2379_v0 }
 0x1cd   :  { %v2389_v6 = vpop.f32.mrb[8].mxu0  ;;  %1142 = vmatprep.subr.bf16.mxu1 %v1141_v8 }
 0x1ce   :  { %3204 = vst [vmem:[#allocation84_spill] sm:$0xff] %v2389_v6  ;;  %v2391_v12 = vpop.f32.mrb[9].mxu0  ;;  %1144 = vmatpush1.bf16.msra.mxu1 %v1143_v36 }
 0x1cf   :  { %3205 = vst [vmem:[#allocation85_spill] sm:$0xff] %v2391_v12 }
 0x1d1   :  { %v2393_v54 = vpop.f32.mrb[10].mxu0 }
 0x1d2   :  { %3206 = vst [vmem:[#allocation86_spill] sm:$0xff] %v2393_v54  ;;  %v1147_v9 = vpack.c.bf16 %v2393_v54, %v2389_v6  ;;  %v2397_v23 = vpop.f32.mrb[11].mxu0 }
 0x1d3   :  { %3207 = vst [vmem:[#allocation87_spill] sm:$0xff] %v2397_v23  ;;  %v1145_v55 = vpack.c.bf16 %v2397_v23, %v2391_v12 }
 0x1d5   :  { %v2401_v17 = vpop.f32.mrb[12].mxu0  ;;  %1146 = vmatprep.subr.bf16.mxu1 %v1145_v55 }
 0x1d6   :  { %3208 = vst [vmem:[#allocation88_spill] sm:$0xff] %v2401_v17  ;;  %v2403_v7 = vpop.f32.mrb[13].mxu0  ;;  %1148 = vmatpush1.bf16.msra.mxu1 %v1147_v9 }
 0x1d7   :  { %3209 = vst [vmem:[#allocation89_spill] sm:$0xff] %v2403_v7 }
 0x1d9   :  { %v2405_v8 = vpop.f32.mrb[14].mxu0 }
 0x1da   :  { %3210 = vst [vmem:[#allocation90_spill] sm:$0xff] %v2405_v8  ;;  %v1151_v36 = vpack.c.bf16 %v2405_v8, %v2401_v17  ;;  %v2409_v0 = vpop.f32.mrb[15].mxu0 }
 0x1db   :  { %3211 = vst [vmem:[#allocation91_spill] sm:$0xff] %v2409_v0  ;;  %v1149_v54 = vpack.c.bf16 %v2409_v0, %v2403_v7 }
 0x1dd   :  { %v2413_v6 = vpop.f32.mrb[16].mxu0  ;;  %1150 = vmatprep.subr.bf16.mxu1 %v1149_v54 }
 0x1de   :  { %3212 = vst [vmem:[#allocation92_spill] sm:$0xff] %v2413_v6  ;;  %v2415_v23 = vpop.f32.mrb[17].mxu0  ;;  %1152 = vmatpush1.bf16.msra.mxu1 %v1151_v36 }
 0x1df   :  { %3213 = vst [vmem:[#allocation93_spill] sm:$0xff] %v2415_v23 }
 0x1e1   :  { %v2417_v55 = vpop.f32.mrb[18].mxu0 }
 0x1e2   :  { %3214 = vst [vmem:[#allocation94_spill] sm:$0xff] %v2417_v55  ;;  %v1155_v9 = vpack.c.bf16 %v2417_v55, %v2413_v6  ;;  %v2421_v12 = vpop.f32.mrb[19].mxu0 }
 0x1e3   :  { %3215 = vst [vmem:[#allocation95_spill] sm:$0xff] %v2421_v12  ;;  %v1153_v8 = vpack.c.bf16 %v2421_v12, %v2415_v23 }
 0x1e5   :  { %v2425_v17 = vpop.f32.mrb[20].mxu0  ;;  %1154 = vmatprep.subr.bf16.mxu1 %v1153_v8 }
 0x1e6   :  { %3216 = vst [vmem:[#allocation96_spill] sm:$0xff] %v2425_v17  ;;  %v2427_v0 = vpop.f32.mrb[21].mxu0  ;;  %1156 = vmatpush1.bf16.msra.mxu1 %v1155_v9 }
 0x1e7   :  { %3217 = vst [vmem:[#allocation97_spill] sm:$0xff] %v2427_v0 }
 0x1e9   :  { %v2429_v54 = vpop.f32.mrb[22].mxu0 }
 0x1ea   :  { %3218 = vst [vmem:[#allocation98_spill] sm:$0xff] %v2429_v54  ;;  %v1159_v36 = vpack.c.bf16 %v2429_v54, %v2425_v17  ;;  %v2433_v7 = vpop.f32.mrb[23].mxu0 }
 0x1eb   :  { %3219 = vst [vmem:[#allocation99_spill] sm:$0xff] %v2433_v7  ;;  %v1157_v55 = vpack.c.bf16 %v2433_v7, %v2427_v0 }
 0x1ed   :  { %v2437_v6 = vpop.f32.mrb[24].mxu0  ;;  %1158 = vmatprep.subr.bf16.mxu1 %v1157_v55 }
 0x1ee   :  { %3220 = vst [vmem:[#allocation100_spill] sm:$0xff] %v2437_v6  ;;  %v2439_v12 = vpop.f32.mrb[25].mxu0  ;;  %1160 = vmatpush1.bf16.msra.mxu1 %v1159_v36 }
 0x1ef   :  { %3221 = vst [vmem:[#allocation101_spill] sm:$0xff] %v2439_v12 }
 0x1f1   :  { %v2441_v8 = vpop.f32.mrb[26].mxu0 }
 0x1f2   :  { %3222 = vst [vmem:[#allocation102_spill] sm:$0xff] %v2441_v8  ;;  %v1163_v9 = vpack.c.bf16 %v2441_v8, %v2437_v6  ;;  %v2445_v23 = vpop.f32.mrb[27].mxu0 }
 0x1f3   :  { %3223 = vst [vmem:[#allocation103_spill] sm:$0xff] %v2445_v23  ;;  %v1161_v54 = vpack.c.bf16 %v2445_v23, %v2439_v12 }
 0x1f5   :  { %v2449_v17 = vpop.f32.mrb[28].mxu0  ;;  %1162 = vmatprep.subr.bf16.mxu1 %v1161_v54 }
 0x1f6   :  { %3224 = vst [vmem:[#allocation104_spill] sm:$0xff] %v2449_v17  ;;  %v2451_v7 = vpop.f32.mrb[29].mxu0  ;;  %1164 = vmatpush1.bf16.msra.mxu1 %v1163_v9 }
 0x1f7   :  { %3225 = vst [vmem:[#allocation105_spill] sm:$0xff] %v2451_v7 }
 0x1f9   :  { %v2453_v55 = vpop.f32.mrb[30].mxu0 }
 0x1fa   :  { %3226 = vst [vmem:[#allocation106_spill] sm:$0xff] %v2453_v55  ;;  %v1167_v36 = vpack.c.bf16 %v2453_v55, %v2449_v17  ;;  %v2457_v0 = vpop.f32.mrb[31].mxu0 }
 0x1fb   :  { %3227 = vst [vmem:[#allocation107_spill] sm:$0xff] %v2457_v0  ;;  %v1165_v8 = vpack.c.bf16 %v2457_v0, %v2451_v7 }
 0x1fd   :  { %v2461_v6 = vpop.f32.mrb[32].mxu0  ;;  %1166 = vmatprep.subr.bf16.mxu1 %v1165_v8 }
 0x1fe   :  { %3228 = vst [vmem:[#allocation108_spill] sm:$0xff] %v2461_v6  ;;  %v2463_v23 = vpop.f32.mrb[33].mxu0  ;;  %1168 = vmatpush1.bf16.msra.mxu1 %v1167_v36 }
 0x1ff   :  { %3229 = vst [vmem:[#allocation109_spill] sm:$0xff] %v2463_v23 }
 0x201   :  { %v2465_v54 = vpop.f32.mrb[34].mxu0 }
 0x202   :  { %3230 = vst [vmem:[#allocation110_spill] sm:$0xff] %v2465_v54  ;;  %v1171_v9 = vpack.c.bf16 %v2465_v54, %v2461_v6  ;;  %v2469_v12 = vpop.f32.mrb[35].mxu0 }
 0x203   :  { %3231 = vst [vmem:[#allocation111_spill] sm:$0xff] %v2469_v12  ;;  %v1169_v55 = vpack.c.bf16 %v2469_v12, %v2463_v23 }
 0x205   :  { %v2473_v17 = vpop.f32.mrb[36].mxu0  ;;  %1170 = vmatprep.subr.bf16.mxu1 %v1169_v55 }
 0x206   :  { %3232 = vst [vmem:[#allocation112_spill] sm:$0xff] %v2473_v17  ;;  %v2475_v0 = vpop.f32.mrb[37].mxu0  ;;  %1172 = vmatpush1.bf16.msra.mxu1 %v1171_v9 }
 0x207   :  { %3233 = vst [vmem:[#allocation113_spill] sm:$0xff] %v2475_v0 }
 0x209   :  { %v2477_v8 = vpop.f32.mrb[38].mxu0 }
 0x20a   :  { %3234 = vst [vmem:[#allocation114_spill] sm:$0xff] %v2477_v8  ;;  %v1175_v36 = vpack.c.bf16 %v2477_v8, %v2473_v17  ;;  %v2481_v7 = vpop.f32.mrb[39].mxu0 }
 0x20b   :  { %3235 = vst [vmem:[#allocation115_spill] sm:$0xff] %v2481_v7  ;;  %v1173_v54 = vpack.c.bf16 %v2481_v7, %v2475_v0 }
 0x20d   :  { %v2485_v6 = vpop.f32.mrb[40].mxu0  ;;  %1174 = vmatprep.subr.bf16.mxu1 %v1173_v54 }
 0x20e   :  { %3236 = vst [vmem:[#allocation116_spill] sm:$0xff] %v2485_v6  ;;  %v2487_v12 = vpop.f32.mrb[41].mxu0  ;;  %1176 = vmatpush1.bf16.msra.mxu1 %v1175_v36 }
 0x20f   :  { %3237 = vst [vmem:[#allocation117_spill] sm:$0xff] %v2487_v12 }
 0x211   :  { %v2489_v55 = vpop.f32.mrb[42].mxu0 }
 0x212   :  { %3238 = vst [vmem:[#allocation118_spill] sm:$0xff] %v2489_v55  ;;  %v1179_v9 = vpack.c.bf16 %v2489_v55, %v2485_v6  ;;  %v2493_v23 = vpop.f32.mrb[43].mxu0 }
 0x213   :  { %3239 = vst [vmem:[#allocation119_spill] sm:$0xff] %v2493_v23  ;;  %v1177_v8 = vpack.c.bf16 %v2493_v23, %v2487_v12 }
 0x215   :  { %v2497_v17 = vpop.f32.mrb[44].mxu0  ;;  %1178 = vmatprep.subr.bf16.mxu1 %v1177_v8 }
 0x216   :  { %3240 = vst [vmem:[#allocation120_spill] sm:$0xff] %v2497_v17  ;;  %v2499_v7 = vpop.f32.mrb[45].mxu0  ;;  %1180 = vmatpush1.bf16.msra.mxu1 %v1179_v9 }
 0x217   :  { %3241 = vst [vmem:[#allocation121_spill] sm:$0xff] %v2499_v7 }
 0x219   :  { %v2501_v54 = vpop.f32.mrb[46].mxu0 }
 0x21a   :  { %3242 = vst [vmem:[#allocation122_spill] sm:$0xff] %v2501_v54  ;;  %v1183_v36 = vpack.c.bf16 %v2501_v54, %v2497_v17  ;;  %v2505_v0 = vpop.f32.mrb[47].mxu0 }
 0x21b   :  { %3243 = vst [vmem:[#allocation123_spill] sm:$0xff] %v2505_v0  ;;  %v1181_v55 = vpack.c.bf16 %v2505_v0, %v2499_v7 }
 0x21d   :  { %v2509_v6 = vpop.f32.mrb[48].mxu0  ;;  %1182 = vmatprep.subr.bf16.mxu1 %v1181_v55 }
 0x21e   :  { %3244 = vst [vmem:[#allocation124_spill] sm:$0xff] %v2509_v6  ;;  %v2511_v23 = vpop.f32.mrb[49].mxu0  ;;  %1184 = vmatpush1.bf16.msra.mxu1 %v1183_v36 }
 0x21f   :  { %3245 = vst [vmem:[#allocation125_spill] sm:$0xff] %v2511_v23 }
 0x221   :  { %v2513_v8 = vpop.f32.mrb[50].mxu0 }
 0x222   :  { %3246 = vst [vmem:[#allocation126_spill] sm:$0xff] %v2513_v8  ;;  %v1187_v9 = vpack.c.bf16 %v2513_v8, %v2509_v6  ;;  %v2517_v12 = vpop.f32.mrb[51].mxu0 }
 0x223   :  { %3247 = vst [vmem:[#allocation127_spill] sm:$0xff] %v2517_v12  ;;  %v1185_v54 = vpack.c.bf16 %v2517_v12, %v2511_v23 }
 0x225   :  { %v2521_v17 = vpop.f32.mrb[52].mxu0  ;;  %1186 = vmatprep.subr.bf16.mxu1 %v1185_v54 }
 0x226   :  { %3248 = vst [vmem:[#allocation128_spill] sm:$0xff] %v2521_v17  ;;  %v2523_v0 = vpop.f32.mrb[53].mxu0  ;;  %1188 = vmatpush1.bf16.msra.mxu1 %v1187_v9 }
 0x227   :  { %3249 = vst [vmem:[#allocation129_spill] sm:$0xff] %v2523_v0 }
 0x229   :  { %v2525_v55 = vpop.f32.mrb[54].mxu0 }
 0x22a   :  { %3250 = vst [vmem:[#allocation130_spill] sm:$0xff] %v2525_v55  ;;  %v1191_v36 = vpack.c.bf16 %v2525_v55, %v2521_v17  ;;  %v2529_v7 = vpop.f32.mrb[55].mxu0 }
 0x22b   :  { %3251 = vst [vmem:[#allocation131_spill] sm:$0xff] %v2529_v7  ;;  %v1189_v8 = vpack.c.bf16 %v2529_v7, %v2523_v0 }
 0x22d   :  { %v2533_v6 = vpop.f32.mrb[56].mxu0  ;;  %1190 = vmatprep.subr.bf16.mxu1 %v1189_v8 }
 0x22e   :  { %v2535_v12 = vpop.f32.mrb[57].mxu0  ;;  %1192 = vmatpush1.bf16.msra.mxu1 %v1191_v36 }
 0x231   :  { %v2537_v54 = vpop.f32.mrb[58].mxu0 }
 0x232   :  { %3252 = vst [vmem:[#allocation132_spill] sm:$0xff] %v2537_v54  ;;  %v1195_v9 = vpack.c.bf16 %v2537_v54, %v2533_v6  ;;  %v2541_v23 = vpop.f32.mrb[59].mxu0 }
 0x233   :  { %v1193_v55 = vpack.c.bf16 %v2541_v23, %v2535_v12 }
 0x235   :  { %v2545_v17 = vpop.f32.mrb[60].mxu0  ;;  %1194 = vmatprep.subr.bf16.mxu1 %v1193_v55 }
 0x236   :  { %v2547_v7 = vpop.f32.mrb[61].mxu0  ;;  %1196 = vmatpush1.bf16.msra.mxu1 %v1195_v9 }
 0x239   :  { %v2549_v8 = vpop.f32.mrb[62].mxu0 }
 0x23a   :  { %v1199_v36 = vpack.c.bf16 %v2549_v8, %v2545_v17  ;;  %v2553_v0 = vpop.f32.mrb[63].mxu0 }
 0x23b   :  { %v1197_v54 = vpack.c.bf16 %v2553_v0, %v2547_v7 }
 0x23d   :  { %1198 = vmatprep.subr.bf16.mxu1 %v1197_v54  ;;  %v3280_v54 = vld [vmem:[#allocation85_spill] sm:$0xff] }
 0x23e   :  { %1200 = vmatpush1.bf16.msra.mxu1 %v1199_v36  ;;  %v3281_v36 = vld [vmem:[#allocation28_spill] sm:$0xff] }
 0x241   :  { %749 = vmatmul.mubr.f32.vlgmr.msra.gmra.mrb[0].mxu1 %v1990_v56 }
 0x242   :  { %754 = vmatprep.mubr.f32.mxu1 %v1995_v25  ;;  %v3276_v25 = vld [vmem:[#allocation83_spill] sm:$0xff] }
 0x245   :  { %755 = vmatmul.mubr.f32.gmra.mrb[2].mxu1 %v2002_v33 }
 0x246   :  { %760 = vmatprep.mubr.f32.mxu1 %v2007_v58  ;;  %v3277_v58 = vld [vmem:[#allocation25_spill] sm:$0xff] }
 0x249   :  { %761 = vmatmul.mubr.f32.gmra.mrb[4].mxu1 %v2014_v38 }
 0x24a   :  { %766 = vmatprep.mubr.f32.mxu1 %v2019_v26  ;;  %v3278_v26 = vld [vmem:[#allocation23_spill] sm:$0xff] }
 0x24d   :  { %767 = vmatmul.mubr.f32.gmra.mrb[6].mxu1 %v2026_v62 }
 0x24e   :  { %772 = vmatprep.mubr.f32.mxu1 %v2031_v35 }
 0x251   :  { %773 = vmatmul.mubr.f32.gmra.mrb[8].mxu1 %v2038_v27  ;;  %v3279_v27 = vld [vmem:[#allocation84_spill] sm:$0xff] }
 0x252   :  { %778 = vmatprep.mubr.f32.mxu1 %v2043_v43 }
 0x255   :  { %779 = vmatmul.mubr.f32.gmra.mrb[10].mxu1 %v2050_v44  ;;  %v3273_v44 = vld [vmem:[#allocation24_spill] sm:$0xff] }
 0x256   :  { %784 = vmatprep.mubr.f32.mxu1 %v2055_v15 }
 0x259   :  { %785 = vmatmul.mubr.f32.gmra.mrb[12].mxu1 %v2062_v63 }
 0x25a   :  { %790 = vmatprep.mubr.f32.mxu1 %v2067_v4  ;;  %v3275_v4 = vld [vmem:[#allocation82_spill] sm:$0xff] }
 0x25d   :  { %791 = vmatmul.mubr.f32.gmra.mrb[14].mxu1 %v2074_v10 }
 0x25e   :  { %796 = vmatprep.mubr.f32.mxu1 %v2079_v46 }
 0x261   :  { %797 = vmatmul.mubr.f32.gmra.mrb[16].mxu1 %v2086_v60  ;;  %v3274_v60 = vld [vmem:[#allocation20_spill] sm:$0xff] }
 0x262   :  { %802 = vmatprep.mubr.f32.mxu1 %v2091_v50 }
 0x265   :  { %803 = vmatmul.mubr.f32.gmra.mrb[18].mxu1 %v2098_v3 }
 0x266   :  { %808 = vmatprep.mubr.f32.mxu1 %v2103_v45 }
 0x269   :  { %809 = vmatmul.mubr.f32.gmra.mrb[20].mxu1 %v2110_v32  ;;  %v3272_v32 = vld [vmem:[#allocation81_spill] sm:$0xff] }
 0x26a   :  { %814 = vmatprep.mubr.f32.mxu1 %v2115_v48  ;;  %v3271_v48 = vld [vmem:[#allocation80_spill] sm:$0xff] }
 0x26d   :  { %815 = vmatmul.mubr.f32.gmra.mrb[22].mxu1 %v2122_v47 }
 0x26e   :  { %820 = vmatprep.mubr.f32.mxu1 %v2127_v40 }
 0x271   :  { %821 = vmatmul.mubr.f32.gmra.mrb[24].mxu1 %v2134_v11 }
 0x272   :  { %826 = vmatprep.mubr.f32.mxu1 %v2139_v16  ;;  %v3270_v16 = vld [vmem:[#allocation21_spill] sm:$0xff] }
 0x275   :  { %827 = vmatmul.mubr.f32.gmra.mrb[26].mxu1 %v2146_v28  ;;  %v3269_v28 = vld [vmem:[#allocation22_spill] sm:$0xff] }
 0x276   :  { %832 = vmatprep.mubr.f32.mxu1 %v2151_v30 }
 0x279   :  { %833 = vmatmul.mubr.f32.gmra.mrb[28].mxu1 %v2158_v59 }
 0x27a   :  { %838 = vmatprep.mubr.f32.mxu1 %v2163_v61 }
 0x27d   :  { %839 = vmatmul.mubr.f32.gmra.mrb[30].mxu1 %v2170_v14  ;;  %v3267_v14 = vld [vmem:[#allocation78_spill] sm:$0xff] }
 0x27e   :  { %844 = vmatprep.mubr.f32.mxu1 %v2175_v5 }
 0x281   :  { %845 = vmatmul.mubr.f32.gmra.mrb[32].mxu1 %v2182_v49  ;;  %v3265_v49 = vld [vmem:[#allocation19_spill] sm:$0xff] }
 0x282   :  { %850 = vmatprep.mubr.f32.mxu1 %v2187_v51 }
 0x285   :  { %851 = vmatmul.mubr.f32.gmra.mrb[34].mxu1 %v2194_v18 }
 0x286   :  { %856 = vmatprep.mubr.f32.mxu1 %v2199_v52  ;;  %v3266_v52 = vld [vmem:[#allocation18_spill] sm:$0xff] }
 0x289   :  { %857 = vmatmul.mubr.f32.gmra.mrb[36].mxu1 %v2206_v39 }
 0x28a   :  { %862 = vmatprep.mubr.f32.mxu1 %v2211_v41 }
 0x28d   :  { %863 = vmatmul.mubr.f32.gmra.mrb[38].mxu1 %v2218_v1 }
 0x28e   :  { %868 = vmatprep.mubr.f32.mxu1 %v2223_v2  ;;  %v3264_v2 = vld [vmem:[#allocation77_spill] sm:$0xff] }
 0x291   :  { %869 = vmatmul.mubr.f32.gmra.mrb[40].mxu1 %v2230_v29  ;;  %v3253_v29 = vld [vmem:[#allocation66_spill] sm:$0xff] }
 0x292   :  { %874 = vmatprep.mubr.f32.mxu1 %v2235_v31 }
 0x295   :  { %875 = vmatmul.mubr.f32.gmra.mrb[42].mxu1 %v2242_v57  ;;  %v3254_v57 = vld [vmem:[#allocation67_spill] sm:$0xff] }
 0x296   :  { %880 = vmatprep.mubr.f32.mxu1 %v2247_v13  ;;  %v3255_v13 = vld [vmem:[#allocation68_spill] sm:$0xff] }
 0x299   :  { %881 = vmatmul.mubr.f32.gmra.mrb[44].mxu1 %v2254_v22  ;;  %v3256_v22 = vld [vmem:[#allocation69_spill] sm:$0xff] }
 0x29a   :  { %886 = vmatprep.mubr.f32.mxu1 %v2259_v53  ;;  %v3257_v53 = vld [vmem:[#allocation70_spill] sm:$0xff] }
 0x29d   :  { %887 = vmatmul.mubr.f32.gmra.mrb[46].mxu1 %v2266_v20  ;;  %v3258_v20 = vld [vmem:[#allocation71_spill] sm:$0xff] }
 0x29e   :  { %892 = vmatprep.mubr.f32.mxu1 %v2271_v24  ;;  %v3259_v24 = vld [vmem:[#allocation72_spill] sm:$0xff] }
 0x2a1   :  { %893 = vmatmul.mubr.f32.gmra.mrb[48].mxu1 %v2278_v21  ;;  %v3260_v21 = vld [vmem:[#allocation73_spill] sm:$0xff] }
 0x2a2   :  { %898 = vmatprep.mubr.f32.mxu1 %v2283_v37  ;;  %v3261_v37 = vld [vmem:[#allocation74_spill] sm:$0xff] }
 0x2a5   :  { %899 = vmatmul.mubr.f32.gmra.mrb[50].mxu1 %v2290_v19  ;;  %v3262_v19 = vld [vmem:[#allocation75_spill] sm:$0xff] }
 0x2a6   :  { %904 = vmatprep.mubr.f32.mxu1 %v2295_v42  ;;  %v3263_v42 = vld [vmem:[#allocation76_spill] sm:$0xff] }
 0x2a9   :  { %905 = vmatmul.mubr.f32.gmra.mrb[52].mxu1 %v3253_v29 }
 0x2aa   :  { %910 = vmatprep.mubr.f32.mxu1 %v3254_v57  ;;  %v3282_v57 = vld [vmem:[#allocation27_spill] sm:$0xff] }
 0x2ad   :  { %911 = vmatmul.mubr.f32.gmra.mrb[54].mxu1 %v3255_v13 }
 0x2ae   :  { %916 = vmatprep.mubr.f32.mxu1 %v3256_v22 }
 0x2b1   :  { %917 = vmatmul.mubr.f32.gmra.mrb[56].mxu1 %v3257_v53  ;;  %v3283_v53 = vld [vmem:[#allocation86_spill] sm:$0xff] }
 0x2b2   :  { %922 = vmatprep.mubr.f32.mxu1 %v3258_v20 }
 0x2b5   :  { %923 = vmatmul.mubr.f32.gmra.mrb[58].mxu1 %v3259_v24 }
 0x2b6   :  { %928 = vmatprep.mubr.f32.mxu1 %v3260_v21  ;;  %v3284_v21 = vld [vmem:[#allocation87_spill] sm:$0xff] }
 0x2b9   :  { %929 = vmatmul.mubr.f32.gmra.mrb[60].mxu1 %v3261_v37 }
 0x2ba   :  { %934 = vmatprep.mubr.f32.mxu1 %v3262_v19  ;;  %v3285_v19 = vld [vmem:[#allocation29_spill] sm:$0xff] }
 0x2bd   :  { %935 = vmatmul.mubr.f32.gmra.mrb[62].mxu1 %v3263_v42 }
 0x314   :  { %v750_v31 = vpop.f32.mrb[0].mxu1 }
 0x315   :  { %v751_v39 = vadd.f32 %v750_v31, %v2365_v34  ;;  %v752_v1 = vpop.f32.mrb[1].mxu1  ;;  %v3268_v34 = vld [vmem:[#allocation79_spill] sm:$0xff]  ;;  %v3286_v31 = vld [vmem:[#allocation26_spill] sm:$0xff] }
 0x316   :  { %v753_v41 = vadd.f32 %v752_v1, %v3264_v2  ;;  %v3287_v2 = vld [vmem:[#allocation88_spill] sm:$0xff] }
 0x317   :  { %v941_v18 = vadd.f32 %v751_v39, %v3265_v49 }
 0x318   :  { %v942_v51 = vadd.f32 %v753_v41, %v3266_v52  ;;  %v756_v59 = vpop.f32.mrb[2].mxu1 }
 0x319   :  { %1005 = vst [vmem:[%s2942_s2] sm:$0xff] %v941_v18  ;;  %v757_v5 = vadd.f32 %v756_v59, %v3267_v14  ;;  %v758_v61 = vpop.f32.mrb[3].mxu1  ;;  %v3288_v18 = vld [vmem:[#allocation89_spill] sm:$0xff]  ;;  %v3290_v14 = vld [vmem:[#allocation31_spill] sm:$0xff] }
 0x31a   :  { %1006 = vst [vmem:[%s2942_s2 + $0x8] sm:$0xff] %v942_v51  ;;  %v759_v11 = vadd.f32 %v758_v61, %v3268_v34  ;;  %v3289_v51 = vld [vmem:[#allocation32_spill] sm:$0xff]  ;;  %v3291_v34 = vld [vmem:[#allocation90_spill] sm:$0xff] }
 0x31b   :  { %v943_v30 = vadd.f32 %v757_v5, %v3269_v28 }
 0x31c   :  { %v944_v40 = vadd.f32 %v759_v11, %v3270_v16  ;;  %v762_v45 = vpop.f32.mrb[4].mxu1 }
 0x31d   :  { %1007 = vst [vmem:[%s2942_s2 + $0x10] sm:$0xff] %v943_v30  ;;  %v763_v47 = vadd.f32 %v762_v45, %v3271_v48  ;;  %v764_v10 = vpop.f32.mrb[5].mxu1  ;;  %v3292_v30 = vld [vmem:[#allocation91_spill] sm:$0xff]  ;;  %v3294_v48 = vld [vmem:[#allocation30_spill] sm:$0xff] }
 0x31e   :  { %1008 = vst [vmem:[%s2942_s2 + $0x18] sm:$0xff] %v944_v40  ;;  %v765_v50 = vadd.f32 %v764_v10, %v3272_v32  ;;  %v3293_v40 = vld [vmem:[#allocation33_spill] sm:$0xff]  ;;  %v3295_v32 = vld [vmem:[#allocation92_spill] sm:$0xff] }
 0x31f   :  { %v945_v3 = vadd.f32 %v763_v47, %v3273_v44 }
 0x320   :  { %v946_v46 = vadd.f32 %v765_v50, %v3274_v60  ;;  %v768_v63 = vpop.f32.mrb[6].mxu1 }
 0x321   :  { %1009 = vst [vmem:[%s2942_s2 + $0x20] sm:$0xff] %v945_v3  ;;  %v769_v15 = vadd.f32 %v768_v63, %v3275_v4  ;;  %v770_v56 = vpop.f32.mrb[7].mxu1  ;;  %v3296_v3 = vld [vmem:[#allocation93_spill] sm:$0xff]  ;;  %v3298_v4 = vld [vmem:[#allocation35_spill] sm:$0xff] }
 0x322   :  { %1010 = vst [vmem:[%s2942_s2 + $0x28] sm:$0xff] %v946_v46  ;;  %v771_v33 = vadd.f32 %v770_v56, %v3276_v25  ;;  %v3297_v46 = vld [vmem:[#allocation36_spill] sm:$0xff]  ;;  %v3299_v25 = vld [vmem:[#allocation94_spill] sm:$0xff] }
 0x323   :  { %v947_v38 = vadd.f32 %v769_v15, %v3277_v58 }
 0x324   :  { %v948_v62 = vadd.f32 %v771_v33, %v3278_v26  ;;  %v774_v35 = vpop.f32.mrb[8].mxu1 }
 0x325   :  { %1011 = vst [vmem:[%s2942_s2 + $0x30] sm:$0xff] %v947_v38  ;;  %v775_v43 = vadd.f32 %v774_v35, %v3279_v27  ;;  %v776_v55 = vpop.f32.mrb[9].mxu1  ;;  %v3300_v38 = vld [vmem:[#allocation95_spill] sm:$0xff]  ;;  %v3302_v27 = vld [vmem:[#allocation34_spill] sm:$0xff] }
 0x326   :  { %1012 = vst [vmem:[%s2942_s2 + $0x38] sm:$0xff] %v948_v62  ;;  %v777_v9 = vadd.f32 %v776_v55, %v3280_v54  ;;  %v3301_v62 = vld [vmem:[#allocation37_spill] sm:$0xff]  ;;  %v3303_v54 = vld [vmem:[#allocation96_spill] sm:$0xff] }
 0x327   :  { %v949_v29 = vadd.f32 %v775_v43, %v3281_v36 }
 0x328   :  { %v950_v13 = vadd.f32 %v777_v9, %v3282_v57  ;;  %v780_v22 = vpop.f32.mrb[10].mxu1 }
 0x329   :  { %1013 = vst [vmem:[%s2942_s2 + $0x40] sm:$0xff] %v949_v29  ;;  %v781_v20 = vadd.f32 %v780_v22, %v3283_v53  ;;  %v782_v24 = vpop.f32.mrb[11].mxu1  ;;  %v3304_v29 = vld [vmem:[#allocation97_spill] sm:$0xff]  ;;  %v3306_v53 = vld [vmem:[#allocation39_spill] sm:$0xff] }
 0x32a   :  { %1014 = vst [vmem:[%s2942_s2 + $0x48] sm:$0xff] %v950_v13  ;;  %v783_v37 = vadd.f32 %v782_v24, %v3284_v21  ;;  %v3305_v13 = vld [vmem:[#allocation40_spill] sm:$0xff]  ;;  %v3307_v21 = vld [vmem:[#allocation98_spill] sm:$0xff] }
 0x32b   :  { %v951_v42 = vadd.f32 %v781_v20, %v3285_v19 }
 0x32c   :  { %v952_v39 = vadd.f32 %v783_v37, %v3286_v31  ;;  %v786_v1 = vpop.f32.mrb[12].mxu1 }
 0x32d   :  { %1015 = vst [vmem:[%s2942_s2 + $0x50] sm:$0xff] %v951_v42  ;;  %v787_v41 = vadd.f32 %v786_v1, %v3287_v2  ;;  %v788_v49 = vpop.f32.mrb[13].mxu1  ;;  %v3308_v42 = vld [vmem:[#allocation99_spill] sm:$0xff]  ;;  %v3310_v2 = vld [vmem:[#allocation38_spill] sm:$0xff] }
 0x32e   :  { %1016 = vst [vmem:[%s2942_s2 + $0x58] sm:$0xff] %v952_v39  ;;  %v789_v52 = vadd.f32 %v788_v49, %v3288_v18  ;;  %v3309_v39 = vld [vmem:[#allocation41_spill] sm:$0xff]  ;;  %v3311_v18 = vld [vmem:[#allocation100_spill] sm:$0xff] }
 0x32f   :  { %v953_v59 = vadd.f32 %v787_v41, %v3289_v51 }
 0x330   :  { %v954_v5 = vadd.f32 %v789_v52, %v3290_v14  ;;  %v792_v61 = vpop.f32.mrb[14].mxu1 }
 0x331   :  { %1017 = vst [vmem:[%s2942_s2 + $0x60] sm:$0xff] %v953_v59  ;;  %v793_v11 = vadd.f32 %v792_v61, %v3291_v34  ;;  %v794_v28 = vpop.f32.mrb[15].mxu1  ;;  %v3312_v59 = vld [vmem:[#allocation101_spill] sm:$0xff]  ;;  %v3314_v34 = vld [vmem:[#allocation43_spill] sm:$0xff] }
 0x332   :  { %1018 = vst [vmem:[%s2942_s2 + $0x68] sm:$0xff] %v954_v5  ;;  %v795_v16 = vadd.f32 %v794_v28, %v3292_v30  ;;  %v3313_v5 = vld [vmem:[#allocation44_spill] sm:$0xff]  ;;  %v3315_v30 = vld [vmem:[#allocation102_spill] sm:$0xff] }
 0x333   :  { %v955_v45 = vadd.f32 %v793_v11, %v3293_v40 }
 0x334   :  { %v956_v47 = vadd.f32 %v795_v16, %v3294_v48  ;;  %v798_v10 = vpop.f32.mrb[16].mxu1 }
 0x335   :  { %1019 = vst [vmem:[%s2942_s2 + $0x70] sm:$0xff] %v955_v45  ;;  %v799_v50 = vadd.f32 %v798_v10, %v3295_v32  ;;  %v800_v44 = vpop.f32.mrb[17].mxu1  ;;  %v3316_v45 = vld [vmem:[#allocation103_spill] sm:$0xff]  ;;  %v3318_v32 = vld [vmem:[#allocation42_spill] sm:$0xff] }
 0x336   :  { %1020 = vst [vmem:[%s2942_s2 + $0x78] sm:$0xff] %v956_v47  ;;  %v801_v60 = vadd.f32 %v800_v44, %v3296_v3  ;;  %v3317_v47 = vld [vmem:[#allocation45_spill] sm:$0xff]  ;;  %v3319_v3 = vld [vmem:[#allocation104_spill] sm:$0xff] }
 0x337   :  { %v957_v63 = vadd.f32 %v799_v50, %v3297_v46 }
 0x338   :  { %v958_v15 = vadd.f32 %v801_v60, %v3298_v4  ;;  %v804_v56 = vpop.f32.mrb[18].mxu1 }
 0x339   :  { %1021 = vst [vmem:[%s2942_s2 + $0x80] sm:$0xff] %v957_v63  ;;  %v805_v33 = vadd.f32 %v804_v56, %v3299_v25  ;;  %v806_v58 = vpop.f32.mrb[19].mxu1  ;;  %v3320_v63 = vld [vmem:[#allocation105_spill] sm:$0xff]  ;;  %v3322_v25 = vld [vmem:[#allocation47_spill] sm:$0xff] }
 0x33a   :  { %1022 = vst [vmem:[%s2942_s2 + $0x88] sm:$0xff] %v958_v15  ;;  %v807_v26 = vadd.f32 %v806_v58, %v3300_v38  ;;  %v3321_v15 = vld [vmem:[#allocation48_spill] sm:$0xff]  ;;  %v3323_v38 = vld [vmem:[#allocation106_spill] sm:$0xff] }
 0x33b   :  { %v959_v35 = vadd.f32 %v805_v33, %v3301_v62 }
 0x33c   :  { %v960_v43 = vadd.f32 %v807_v26, %v3302_v27  ;;  %v810_v55 = vpop.f32.mrb[20].mxu1 }
 0x33d   :  { %1023 = vst [vmem:[%s2942_s2 + $0x90] sm:$0xff] %v959_v35  ;;  %v811_v9 = vadd.f32 %v810_v55, %v3303_v54  ;;  %v812_v36 = vpop.f32.mrb[21].mxu1  ;;  %v3324_v35 = vld [vmem:[#allocation107_spill] sm:$0xff]  ;;  %v3326_v54 = vld [vmem:[#allocation46_spill] sm:$0xff] }
 0x33e   :  { %1024 = vst [vmem:[%s2942_s2 + $0x98] sm:$0xff] %v960_v43  ;;  %v813_v57 = vadd.f32 %v812_v36, %v3304_v29  ;;  %v3325_v43 = vld [vmem:[#allocation49_spill] sm:$0xff]  ;;  %v3327_v29 = vld [vmem:[#allocation108_spill] sm:$0xff] }
 0x33f   :  { %v961_v22 = vadd.f32 %v811_v9, %v3305_v13 }
 0x340   :  { %v962_v20 = vadd.f32 %v813_v57, %v3306_v53  ;;  %v816_v24 = vpop.f32.mrb[22].mxu1 }
 0x341   :  { %1025 = vst [vmem:[%s2942_s2 + $0xa0] sm:$0xff] %v961_v22  ;;  %v817_v37 = vadd.f32 %v816_v24, %v3307_v21  ;;  %v818_v19 = vpop.f32.mrb[23].mxu1  ;;  %v3328_v22 = vld [vmem:[#allocation109_spill] sm:$0xff]  ;;  %v3330_v21 = vld [vmem:[#allocation51_spill] sm:$0xff] }
 0x342   :  { %1026 = vst [vmem:[%s2942_s2 + $0xa8] sm:$0xff] %v962_v20  ;;  %v819_v31 = vadd.f32 %v818_v19, %v3308_v42  ;;  %v3329_v20 = vld [vmem:[#allocation52_spill] sm:$0xff]  ;;  %v3331_v42 = vld [vmem:[#allocation110_spill] sm:$0xff] }
 0x343   :  { %v963_v1 = vadd.f32 %v817_v37, %v3309_v39 }
 0x344   :  { %v964_v41 = vadd.f32 %v819_v31, %v3310_v2  ;;  %v822_v49 = vpop.f32.mrb[24].mxu1 }
 0x345   :  { %1027 = vst [vmem:[%s2942_s2 + $0xb0] sm:$0xff] %v963_v1  ;;  %v823_v52 = vadd.f32 %v822_v49, %v3311_v18  ;;  %v824_v51 = vpop.f32.mrb[25].mxu1  ;;  %v3332_v1 = vld [vmem:[#allocation111_spill] sm:$0xff]  ;;  %v3334_v18 = vld [vmem:[#allocation50_spill] sm:$0xff] }
 0x346   :  { %1028 = vst [vmem:[%s2942_s2 + $0xb8] sm:$0xff] %v964_v41  ;;  %v825_v14 = vadd.f32 %v824_v51, %v3312_v59  ;;  %v3333_v41 = vld [vmem:[#allocation53_spill] sm:$0xff]  ;;  %v3335_v59 = vld [vmem:[#allocation112_spill] sm:$0xff] }
 0x347   :  { %v965_v61 = vadd.f32 %v823_v52, %v3313_v5 }
 0x348   :  { %v966_v11 = vadd.f32 %v825_v14, %v3314_v34  ;;  %v828_v28 = vpop.f32.mrb[26].mxu1 }
 0x349   :  { %1029 = vst [vmem:[%s2942_s2 + $0xc0] sm:$0xff] %v965_v61  ;;  %v829_v16 = vadd.f32 %v828_v28, %v3315_v30  ;;  %v830_v40 = vpop.f32.mrb[27].mxu1  ;;  %v3336_v61 = vld [vmem:[#allocation113_spill] sm:$0xff]  ;;  %v3338_v30 = vld [vmem:[#allocation55_spill] sm:$0xff] }
 0x34a   :  { %1030 = vst [vmem:[%s2942_s2 + $0xc8] sm:$0xff] %v966_v11  ;;  %v831_v48 = vadd.f32 %v830_v40, %v3316_v45  ;;  %v3337_v11 = vld [vmem:[#allocation56_spill] sm:$0xff]  ;;  %v3339_v45 = vld [vmem:[#allocation114_spill] sm:$0xff] }
 0x34b   :  { %v967_v10 = vadd.f32 %v829_v16, %v3317_v47 }
 0x34c   :  { %v968_v50 = vadd.f32 %v831_v48, %v3318_v32  ;;  %v834_v44 = vpop.f32.mrb[28].mxu1 }
 0x34d   :  { %1031 = vst [vmem:[%s2942_s2 + $0xd0] sm:$0xff] %v967_v10  ;;  %v835_v60 = vadd.f32 %v834_v44, %v3319_v3  ;;  %v836_v46 = vpop.f32.mrb[29].mxu1  ;;  %v3340_v10 = vld [vmem:[#allocation115_spill] sm:$0xff]  ;;  %v3342_v3 = vld [vmem:[#allocation54_spill] sm:$0xff] }
 0x34e   :  { %1032 = vst [vmem:[%s2942_s2 + $0xd8] sm:$0xff] %v968_v50  ;;  %v837_v4 = vadd.f32 %v836_v46, %v3320_v63  ;;  %v3341_v50 = vld [vmem:[#allocation57_spill] sm:$0xff]  ;;  %v3343_v63 = vld [vmem:[#allocation116_spill] sm:$0xff] }
 0x34f   :  { %v969_v56 = vadd.f32 %v835_v60, %v3321_v15 }
 0x350   :  { %v970_v33 = vadd.f32 %v837_v4, %v3322_v25  ;;  %v840_v58 = vpop.f32.mrb[30].mxu1 }
 0x351   :  { %1033 = vst [vmem:[%s2942_s2 + $0xe0] sm:$0xff] %v969_v56  ;;  %v841_v26 = vadd.f32 %v840_v58, %v3323_v38  ;;  %v842_v62 = vpop.f32.mrb[31].mxu1  ;;  %v3344_v56 = vld [vmem:[#allocation117_spill] sm:$0xff]  ;;  %v3346_v38 = vld [vmem:[#allocation59_spill] sm:$0xff] }
 0x352   :  { %1034 = vst [vmem:[%s2942_s2 + $0xe8] sm:$0xff] %v970_v33  ;;  %v843_v27 = vadd.f32 %v842_v62, %v3324_v35  ;;  %v3345_v33 = vld [vmem:[#allocation60_spill] sm:$0xff]  ;;  %v3347_v35 = vld [vmem:[#allocation118_spill] sm:$0xff] }
 0x353   :  { %v971_v55 = vadd.f32 %v841_v26, %v3325_v43 }
 0x354   :  { %v972_v9 = vadd.f32 %v843_v27, %v3326_v54  ;;  %v846_v36 = vpop.f32.mrb[32].mxu1 }
 0x355   :  { %1035 = vst [vmem:[%s2942_s2 + $0xf0] sm:$0xff] %v971_v55  ;;  %v847_v57 = vadd.f32 %v846_v36, %v3327_v29  ;;  %v848_v13 = vpop.f32.mrb[33].mxu1  ;;  %v3348_v55 = vld [vmem:[#allocation119_spill] sm:$0xff]  ;;  %v3350_v29 = vld [vmem:[#allocation58_spill] sm:$0xff] }
 0x356   :  { %1036 = vst [vmem:[%s2942_s2 + $0xf8] sm:$0xff] %v972_v9  ;;  %v849_v53 = vadd.f32 %v848_v13, %v3328_v22  ;;  %v3349_v9 = vld [vmem:[#allocation61_spill] sm:$0xff]  ;;  %v3351_v22 = vld [vmem:[#allocation120_spill] sm:$0xff] }
 0x357   :  { %v973_v24 = vadd.f32 %v847_v57, %v3329_v20 }
 0x358   :  { %v974_v37 = vadd.f32 %v849_v53, %v3330_v21  ;;  %v852_v19 = vpop.f32.mrb[34].mxu1 }
 0x359   :  { %1037 = vst [vmem:[%s2942_s2 + $0x100] sm:$0xff] %v973_v24  ;;  %v853_v31 = vadd.f32 %v852_v19, %v3331_v42  ;;  %v854_v39 = vpop.f32.mrb[35].mxu1  ;;  %v3352_v24 = vld [vmem:[#allocation121_spill] sm:$0xff]  ;;  %v3354_v42 = vld [vmem:[#allocation63_spill] sm:$0xff] }
 0x35a   :  { %1038 = vst [vmem:[%s2942_s2 + $0x108] sm:$0xff] %v974_v37  ;;  %v855_v2 = vadd.f32 %v854_v39, %v3332_v1  ;;  %v3353_v37 = vld [vmem:[#allocation3_spill] sm:$0xff]  ;;  %v3355_v1 = vld [vmem:[#allocation122_spill] sm:$0xff] }
 0x35b   :  { %v975_v49 = vadd.f32 %v853_v31, %v3333_v41 }
 0x35c   :  { %v976_v52 = vadd.f32 %v855_v2, %v3334_v18  ;;  %v858_v51 = vpop.f32.mrb[36].mxu1 }
 0x35d   :  { %1039 = vst [vmem:[%s2942_s2 + $0x110] sm:$0xff] %v975_v49  ;;  %v859_v14 = vadd.f32 %v858_v51, %v3335_v59  ;;  %v860_v5 = vpop.f32.mrb[37].mxu1  ;;  %v3356_v49 = vld [vmem:[#allocation123_spill] sm:$0xff]  ;;  %v3358_v59 = vld [vmem:[#allocation62_spill] sm:$0xff] }
 0x35e   :  { %1040 = vst [vmem:[%s2942_s2 + $0x118] sm:$0xff] %v976_v52  ;;  %v861_v34 = vadd.f32 %v860_v5, %v3336_v61  ;;  %v3357_v52 = vld [vmem:[#allocation2_spill] sm:$0xff]  ;;  %v3359_v61 = vld [vmem:[#allocation124_spill] sm:$0xff] }
 0x35f   :  { %v977_v28 = vadd.f32 %v859_v14, %v3337_v11 }
 0x360   :  { %v978_v16 = vadd.f32 %v861_v34, %v3338_v30  ;;  %v864_v40 = vpop.f32.mrb[38].mxu1 }
 0x361   :  { %1041 = vst [vmem:[%s2942_s2 + $0x120] sm:$0xff] %v977_v28  ;;  %v865_v48 = vadd.f32 %v864_v40, %v3339_v45  ;;  %v866_v47 = vpop.f32.mrb[39].mxu1  ;;  %v3360_v28 = vld [vmem:[#allocation125_spill] sm:$0xff]  ;;  %v3362_v45 = vld [vmem:[#allocation7_spill] sm:$0xff] }
 0x362   :  { %1042 = vst [vmem:[%s2942_s2 + $0x128] sm:$0xff] %v978_v16  ;;  %v867_v32 = vadd.f32 %v866_v47, %v3340_v10  ;;  %v3361_v16 = vld [vmem:[#allocation6_spill] sm:$0xff] }
 0x363   :  { %v979_v44 = vadd.f32 %v865_v48, %v3341_v50  ;;  %v3363_v10 = vld [vmem:[#allocation126_spill] sm:$0xff] }
 0x364   :  { %v980_v60 = vadd.f32 %v867_v32, %v3342_v3  ;;  %v870_v46 = vpop.f32.mrb[40].mxu1 }
 0x365   :  { %1043 = vst [vmem:[%s2942_s2 + $0x130] sm:$0xff] %v979_v44  ;;  %v871_v4 = vadd.f32 %v870_v46, %v3343_v63  ;;  %v872_v15 = vpop.f32.mrb[41].mxu1  ;;  %v3364_v44 = vld [vmem:[#allocation127_spill] sm:$0xff]  ;;  %v3366_v63 = vld [vmem:[#allocation5_spill] sm:$0xff] }
 0x366   :  { %1044 = vst [vmem:[%s2942_s2 + $0x138] sm:$0xff] %v980_v60  ;;  %v873_v25 = vadd.f32 %v872_v15, %v3344_v56  ;;  %v3365_v60 = vld [vmem:[#allocation4_spill] sm:$0xff] }
 0x367   :  { %v981_v58 = vadd.f32 %v871_v4, %v3345_v33  ;;  %v3367_v56 = vld [vmem:[#allocation128_spill] sm:$0xff] }
 0x368   :  { %v982_v26 = vadd.f32 %v873_v25, %v3346_v38  ;;  %v876_v62 = vpop.f32.mrb[42].mxu1 }
 0x369   :  { %1045 = vst [vmem:[%s2942_s2 + $0x140] sm:$0xff] %v981_v58  ;;  %v877_v27 = vadd.f32 %v876_v62, %v3347_v35  ;;  %v878_v43 = vpop.f32.mrb[43].mxu1  ;;  %v3368_v58 = vld [vmem:[#allocation129_spill] sm:$0xff]  ;;  %v3370_v35 = vld [vmem:[#allocation11_spill] sm:$0xff] }
 0x36a   :  { %1046 = vst [vmem:[%s2942_s2 + $0x148] sm:$0xff] %v982_v26  ;;  %v879_v54 = vadd.f32 %v878_v43, %v3348_v55  ;;  %v3369_v26 = vld [vmem:[#allocation10_spill] sm:$0xff] }
 0x36b   :  { %v983_v36 = vadd.f32 %v877_v27, %v3349_v9  ;;  %v3371_v55 = vld [vmem:[#allocation130_spill] sm:$0xff] }
 0x36c   :  { %v984_v57 = vadd.f32 %v879_v54, %v3350_v29  ;;  %v882_v13 = vpop.f32.mrb[44].mxu1 }
 0x36d   :  { %1047 = vst [vmem:[%s2942_s2 + $0x150] sm:$0xff] %v983_v36  ;;  %v883_v53 = vadd.f32 %v882_v13, %v3351_v22  ;;  %v884_v20 = vpop.f32.mrb[45].mxu1  ;;  %v3372_v36 = vld [vmem:[#allocation131_spill] sm:$0xff]  ;;  %v3374_v22 = vld [vmem:[#allocation9_spill] sm:$0xff] }
 0x36e   :  { %1048 = vst [vmem:[%s2942_s2 + $0x158] sm:$0xff] %v984_v57  ;;  %v885_v21 = vadd.f32 %v884_v20, %v3352_v24  ;;  %v3373_v57 = vld [vmem:[#allocation8_spill] sm:$0xff] }
 0x36f   :  { %v985_v19 = vadd.f32 %v883_v53, %v3353_v37 }
 0x370   :  { %v986_v31 = vadd.f32 %v885_v21, %v3354_v42  ;;  %v888_v39 = vpop.f32.mrb[46].mxu1 }
 0x371   :  { %1049 = vst [vmem:[%s2942_s2 + $0x160] sm:$0xff] %v985_v19  ;;  %v889_v2 = vadd.f32 %v888_v39, %v3355_v1  ;;  %v890_v41 = vpop.f32.mrb[47].mxu1  ;;  %v3375_v19 = vld [vmem:[#allocation14_spill] sm:$0xff] }
 0x372   :  { %1050 = vst [vmem:[%s2942_s2 + $0x168] sm:$0xff] %v986_v31  ;;  %v891_v18 = vadd.f32 %v890_v41, %v3356_v49  ;;  %v3376_v31 = vld [vmem:[#allocation15_spill] sm:$0xff] }
 0x373   :  { %v987_v51 = vadd.f32 %v889_v2, %v3357_v52  ;;  %v3377_v2 = vld [vmem:[#allocation132_spill] sm:$0xff]  ;;  %v3379_v52 = vld [vmem:[#allocation13_spill] sm:$0xff] }
 0x374   :  { %v988_v14 = vadd.f32 %v891_v18, %v3358_v59  ;;  %v894_v5 = vpop.f32.mrb[48].mxu1  ;;  %v3378_v18 = vld [vmem:[#allocation12_spill] sm:$0xff] }
 0x375   :  { %1051 = vst [vmem:[%s2942_s2 + $0x170] sm:$0xff] %v987_v51  ;;  %v895_v34 = vadd.f32 %v894_v5, %v3359_v61  ;;  %v896_v11 = vpop.f32.mrb[49].mxu1 }
 0x376   :  { %1052 = vst [vmem:[%s2942_s2 + $0x178] sm:$0xff] %v988_v14  ;;  %v897_v30 = vadd.f32 %v896_v11, %v3360_v28  ;;  %v3381_v11 = vld [vmem:[#allocation65_spill] sm:$0xff] }
 0x377   :  { %v989_v40 = vadd.f32 %v895_v34, %v3361_v16  ;;  %v3380_v34 = vld [vmem:[#allocation17_spill] sm:$0xff] }
 0x378   :  { %v990_v48 = vadd.f32 %v897_v30, %v3362_v45  ;;  %v900_v47 = vpop.f32.mrb[50].mxu1  ;;  %v3382_v45 = vld [vmem:[#allocation16_spill] sm:$0xff] }
 0x379   :  { %1053 = vst [vmem:[%s2942_s2 + $0x180] sm:$0xff] %v989_v40  ;;  %v901_v32 = vadd.f32 %v900_v47, %v3363_v10  ;;  %v902_v50 = vpop.f32.mrb[51].mxu1 }
 0x37a   :  { %1054 = vst [vmem:[%s2942_s2 + $0x188] sm:$0xff] %v990_v48  ;;  %v903_v3 = vadd.f32 %v902_v50, %v3364_v44  ;;  %v3383_v48 = vld [vmem:[#allocation64_spill] sm:$0xff] }
 0x37b   :  { %v991_v46 = vadd.f32 %v901_v32, %v3365_v60 }
 0x37c   :  { %v992_v4 = vadd.f32 %v903_v3, %v3366_v63  ;;  %v906_v15 = vpop.f32.mrb[52].mxu1 }
 0x37d   :  { %1055 = vst [vmem:[%s2942_s2 + $0x190] sm:$0xff] %v991_v46  ;;  %v907_v25 = vadd.f32 %v906_v15, %v3367_v56  ;;  %v908_v33 = vpop.f32.mrb[53].mxu1 }
 0x37e   :  { %1056 = vst [vmem:[%s2942_s2 + $0x198] sm:$0xff] %v992_v4  ;;  %v909_v38 = vadd.f32 %v908_v33, %v3368_v58 }
 0x37f   :  { %v993_v62 = vadd.f32 %v907_v25, %v3369_v26 }
 0x380   :  { %v994_v27 = vadd.f32 %v909_v38, %v3370_v35  ;;  %v912_v43 = vpop.f32.mrb[54].mxu1 }
 0x381   :  { %1057 = vst [vmem:[%s2942_s2 + $0x1a0] sm:$0xff] %v993_v62  ;;  %v913_v54 = vadd.f32 %v912_v43, %v3371_v55  ;;  %v914_v9 = vpop.f32.mrb[55].mxu1 }
 0x382   :  { %1058 = vst [vmem:[%s2942_s2 + $0x1a8] sm:$0xff] %v994_v27  ;;  %v915_v29 = vadd.f32 %v914_v9, %v3372_v36 }
 0x383   :  { %v995_v13 = vadd.f32 %v913_v54, %v3373_v57 }
 0x384   :  { %v996_v53 = vadd.f32 %v915_v29, %v3374_v22  ;;  %v918_v20 = vpop.f32.mrb[56].mxu1 }
 0x385   :  { %1059 = vst [vmem:[%s2942_s2 + $0x1b0] sm:$0xff] %v995_v13  ;;  %v919_v24 = vadd.f32 %v918_v20, %v2533_v6  ;;  %v920_v21 = vpop.f32.mrb[57].mxu1 }
 0x386   :  { %1060 = vst [vmem:[%s2942_s2 + $0x1b8] sm:$0xff] %v996_v53  ;;  %v921_v37 = vadd.f32 %v920_v21, %v2535_v12 }
 0x387   :  { %v997_v42 = vadd.f32 %v919_v24, %v3375_v19 }
 0x388   :  { %v998_v39 = vadd.f32 %v921_v37, %v3376_v31  ;;  %v924_v1 = vpop.f32.mrb[58].mxu1 }
 0x389   :  { %1061 = vst [vmem:[%s2942_s2 + $0x1c0] sm:$0xff] %v997_v42  ;;  %v925_v41 = vadd.f32 %v924_v1, %v3377_v2  ;;  %v926_v49 = vpop.f32.mrb[59].mxu1 }
 0x38a   :  { %1062 = vst [vmem:[%s2942_s2 + $0x1c8] sm:$0xff] %v998_v39  ;;  %v927_v6 = vadd.f32 %v926_v49, %v2541_v23 }
 0x38b   :  { %v999_v12 = vadd.f32 %v925_v41, %v3378_v18 }
 0x38c   :  { %v1000_v51 = vadd.f32 %v927_v6, %v3379_v52  ;;  %v930_v59 = vpop.f32.mrb[60].mxu1 }
 0x38d   :  { %1063 = vst [vmem:[%s2942_s2 + $0x1d0] sm:$0xff] %v999_v12  ;;  %v931_v14 = vadd.f32 %v930_v59, %v2545_v17  ;;  %v932_v5 = vpop.f32.mrb[61].mxu1 }
 0x38e   :  { %1064 = vst [vmem:[%s2942_s2 + $0x1d8] sm:$0xff] %v1000_v51  ;;  %v933_v61 = vadd.f32 %v932_v5, %v2547_v7 }
 0x38f   :  { %v1001_v23 = vadd.f32 %v931_v14, %v3380_v34 }
 0x390   :  { %v1002_v28 = vadd.f32 %v933_v61, %v3381_v11  ;;  %v936_v30 = vpop.f32.mrb[62].mxu1 }
 0x391   :  { %1065 = vst [vmem:[%s2942_s2 + $0x1e0] sm:$0xff] %v1001_v23  ;;  %v937_v16 = vadd.f32 %v936_v30, %v2549_v8  ;;  %v938_v40 = vpop.f32.mrb[63].mxu1 }
 0x392   :  { %1066 = vst [vmem:[%s2942_s2 + $0x1e8] sm:$0xff] %v1002_v28  ;;  %v939_v17 = vadd.f32 %v938_v40, %v2553_v0 }
 0x393   :  { %v1003_v7 = vadd.f32 %v937_v16, %v3382_v45 }
 0x394   :  { %v1004_v47 = vadd.f32 %v939_v17, %v3383_v48 }
 0x395   :  { %1067 = vst [vmem:[%s2942_s2 + $0x1f0] sm:$0xff] %v1003_v7 }
 0x396   :  { %1068 = vst [vmem:[%s2942_s2 + $0x1f8] sm:$0xff] %v1004_v47 }

</bundles_post_ra>
